<compile_context>
chip_gen: v7x
topology: tpu7x:2x2x1
jax: 0.10.0
libtpu: 0.0.40
codegen_flags: <defaults>
</compile_context>

<pallas_src>
import functools

import jax
import jax.numpy as jnp
from jax.experimental import pallas as pl
from jax.experimental.pallas import tpu as pltpu


# ----------------------------- Pallas kernel --------------------------------
def metanet_kernel(x_ref,
                   w1_ref, t1_ref,
                   w2_ref, t2_ref,
                   w3_ref, t3_ref,
                   w4_ref, t4_ref,
                   o_ref):
    """Fused 4x (Linear[BN-folded] -> ReLU). bf16 MXU inputs, f32 accumulate."""

    def layer(h_bf16, w_ref, t_ref):
        # (TM, Din) @ (Din, Dout) on the MXU with f32 accumulation.
        z = jnp.dot(h_bf16, w_ref[...], preferred_element_type=jnp.float32)
        return jnp.maximum(z + t_ref[...], 0.0)       # folded BN shift + ReLU (f32)

    # f32 -> bf16 cast in-kernel: avoids a wrapper-side padded bf16 copy of x
    # (an extra full HBM read+write); the cast hides under the MXU.
    h = x_ref[...].astype(jnp.bfloat16)               # (TM, 51)
    h = layer(h, w1_ref, t1_ref).astype(jnp.bfloat16)
    h = layer(h, w2_ref, t2_ref).astype(jnp.bfloat16)
    h = layer(h, w3_ref, t3_ref).astype(jnp.bfloat16)
    h = layer(h, w4_ref, t4_ref)                      # last layer stays f32
    o_ref[...] = h.astype(o_ref.dtype)


# ---------------------- one-time (init-path) BN fold -------------------------
def fold_bn_params(params, eps=1e-5):
    """Fold BatchNorm (eval mode) into bf16 weights + f32 shifts.

    Call ONCE at model-load time; the result is what the forward consumes, so
    no per-call fold / weight re-write happens in the hot path.
    """
    folded = []
    for p in params:
        scale = p["gamma"] / jnp.sqrt(p["var"] + eps)              # (Dout,)
        shift = p["beta"] - p["mean"] * scale                      # (Dout,)
        w = (p["w"] * scale[None, :]).astype(jnp.bfloat16)         # (Din, Dout) bf16
        t = (p["b"] * scale + shift)[None, :].astype(jnp.float32)  # (1, Dout) f32
        folded.append((w, t))
    return tuple(folded)


# ------------------------------ forward --------------------------------------
def _round_up(v, m):
    return -(-v // m) * m


@functools.partial(jax.jit, static_argnames=("block_b", "out_dtype"))
def metanet_forward_folded(x, folded, *, block_b=512, out_dtype=jnp.float32):
    """x: (B, 51) f32; folded: output of fold_bn_params()."""
    B, din = x.shape
    out_dim = folded[-1][0].shape[1]

    # --- pick the batch tile (multiples of 16: bf16 sublane pack) -------------
    if B > block_b:
        tm = block_b                             # large batch: 512-row tiles
    elif B >= 64:
        tm = _round_up(-(-B // 2), 16)           # grid >= 2 -> both v7x TCs busy
    else:
        tm = _round_up(B, 16)                    # tiny batch: weight-DMA-latency bound
    b_pad = _round_up(B, tm)
    # Only the batch dim is padded, and only when needed; x keeps f32 dtype.
    xp = x if b_pad == B else jnp.pad(x, ((0, b_pad - B), (0, 0)))

    flat_args = [xp]
    # K=51 as a full-extent last block dim is legal; no K padding of x or W1.
    in_specs = [pl.BlockSpec((tm, din), lambda i: (i, 0))]
    for w, t in folded:
        flat_args += [w, t]
        # Weights / shifts: same block every grid step -> stay VMEM-resident.
        in_specs.append(pl.BlockSpec(w.shape, lambda i: (0, 0)))
        in_specs.append(pl.BlockSpec(t.shape, lambda i: (0, 0)))

    out = pl.pallas_call(
        metanet_kernel,
        out_shape=jax.ShapeDtypeStruct((b_pad, out_dim), out_dtype),
        grid=(b_pad // tm,),
        in_specs=in_specs,
        out_specs=pl.BlockSpec((tm, out_dim), lambda i: (i, 0)),
        compiler_params=pltpu.CompilerParams(
            dimension_semantics=("parallel",),   # shards batch across v7x's 2 TCs
            vmem_limit_bytes=32 << 20,           # ~12 MiB used at tm=512; safe on 64 MiB v7x
        ),
    )(*flat_args)
    return out[:B]


# ------------------------- deterministic parameter init ----------------------
def init_params(key, dims):
    """dims = [51, 1024, 512, 256, 128]; PyTorch-like uniform init (deterministic)."""
    params = []
    for i, (din, dout) in enumerate(zip(dims[:-1], dims[1:])):
        k = jax.random.fold_in(key, i)
        kw, kb, kg, kbe, km, kv = jax.random.split(k, 6)
        bound = 1.0 / jnp.sqrt(jnp.float32(din))
        params.append(dict(
            w=jax.random.uniform(kw, (din, dout), jnp.float32, -bound, bound),
            b=jax.random.uniform(kb, (dout,), jnp.float32, -bound, bound),
            gamma=1.0 + 0.1 * jax.random.normal(kg, (dout,), jnp.float32),
            beta=0.1 * jax.random.normal(kbe, (dout,), jnp.float32),
            mean=0.1 * jax.random.normal(km, (dout,), jnp.float32),
            var=jnp.abs(1.0 + 0.1 * jax.random.normal(kv, (dout,), jnp.float32)),
        ))
    return params


# pure-JAX f32 reference for a sanity check
def metanet_ref(x, params, eps=1e-5):
    h = x
    for p in params:
        z = h @ p["w"] + p["b"]
        z = (z - p["mean"]) / jnp.sqrt(p["var"] + eps) * p["gamma"] + p["beta"]
        h = jnp.maximum(z, 0.0)
    return h


if __name__ == "__main__":
    # config defaults: meta_input_dim=51, meta_embedding_dim=128
    B, INPUT_DIM = 8, 51
    DIMS = [INPUT_DIM, 1024, 512, 256, 128]

    key = jax.random.PRNGKey(0)
    kx, kp = jax.random.split(key)
    x = jax.random.normal(kx, (B, INPUT_DIM), jnp.float32)
    params = init_params(kp, DIMS)

    # BN fold is hoisted out of the per-call path (done once, here).
    folded = jax.block_until_ready(fold_bn_params(params))

    out = metanet_forward_folded(x, folded)
    out = jax.block_until_ready(out)

    ref = metanet_ref(x, params)
    assert out.shape == (B, 128), out.shape
    # bf16 weights/activations (f32 accumulate) -> loosened tolerance vs f32 ref.
    assert jnp.allclose(out, ref, atol=5e-2, rtol=5e-2), \
        float(jnp.max(jnp.abs(out - ref)))

    print("KERNEL_OK")
</pallas_src>

<mosaic_0001>
module attributes {stable_mosaic.version = 11 : i64} {
  func.func @metanet_kernel(%arg0: i32, %arg1: memref<16x51xf32, #tpu.memory_space<vmem>>, %arg2: memref<51x1024xbf16, #tpu.memory_space<vmem>>, %arg3: memref<1x1024xf32, #tpu.memory_space<vmem>>, %arg4: memref<1024x512xbf16, #tpu.memory_space<vmem>>, %arg5: memref<1x512xf32, #tpu.memory_space<vmem>>, %arg6: memref<512x256xbf16, #tpu.memory_space<vmem>>, %arg7: memref<1x256xf32, #tpu.memory_space<vmem>>, %arg8: memref<256x128xbf16, #tpu.memory_space<vmem>>, %arg9: memref<1x128xf32, #tpu.memory_space<vmem>>, %arg10: memref<16x128xf32, #tpu.memory_space<vmem>>) attributes {dimension_semantics = [#tpu.dimension_semantics<parallel>], iteration_bounds = array<i64: 1>, scalar_prefetch = 0 : i64, scratch_operands = 0 : i64, tpu.core_type = #tpu.core_type<tc>, window_params = [{transform_indices = @transform_0, window_bounds = array<i64: 16, 51>}, {pipeline_mode = #tpu.pipeline_mode<synchronous>, transform_indices = @transform_1, window_bounds = array<i64: 51, 1024>}, {pipeline_mode = #tpu.pipeline_mode<synchronous>, transform_indices = @transform_2, window_bounds = array<i64: 1, 1024>}, {pipeline_mode = #tpu.pipeline_mode<synchronous>, transform_indices = @transform_3, window_bounds = array<i64: 1024, 512>}, {pipeline_mode = #tpu.pipeline_mode<synchronous>, transform_indices = @transform_4, window_bounds = array<i64: 1, 512>}, {pipeline_mode = #tpu.pipeline_mode<synchronous>, transform_indices = @transform_5, window_bounds = array<i64: 512, 256>}, {pipeline_mode = #tpu.pipeline_mode<synchronous>, transform_indices = @transform_6, window_bounds = array<i64: 1, 256>}, {pipeline_mode = #tpu.pipeline_mode<synchronous>, transform_indices = @transform_7, window_bounds = array<i64: 256, 128>}, {pipeline_mode = #tpu.pipeline_mode<synchronous>, transform_indices = @transform_8, window_bounds = array<i64: 1, 128>}, {transform_indices = @transform_9, window_bounds = array<i64: 16, 128>}]} {
    %c0 = arith.constant 0 : index
    %c0_0 = arith.constant 0 : index
    %0 = vector.load %arg1[%c0, %c0_0] : memref<16x51xf32, #tpu.memory_space<vmem>>, vector<16x51xf32>
    %1 = arith.truncf %0 : vector<16x51xf32> to vector<16x51xbf16>
    %c0_1 = arith.constant 0 : index
    %c0_2 = arith.constant 0 : index
    %2 = vector.load %arg2[%c0_1, %c0_2] : memref<51x1024xbf16, #tpu.memory_space<vmem>>, vector<51x1024xbf16>
    %cst = arith.constant dense<0.000000e+00> : vector<16x1024xf32>
    %3 = tpu.matmul %1, %2, %cst {dimension_numbers = #tpu.dot_dimension_numbers<[1], [0], [0], [1], [0, 0, 1, 1], [], []>} : vector<16x51xbf16>, vector<51x1024xbf16>, vector<16x1024xf32> -> vector<16x1024xf32>
    %c0_3 = arith.constant 0 : index
    %c0_4 = arith.constant 0 : index
    %4 = vector.load %arg3[%c0_3, %c0_4] : memref<1x1024xf32, #tpu.memory_space<vmem>>, vector<1x1024xf32>
    %5 = vector.broadcast %4 : vector<1x1024xf32> to vector<16x1024xf32>
    %6 = arith.addf %3, %5 : vector<16x1024xf32>
    %cst_5 = arith.constant 0.000000e+00 : f32
    %7 = vector.broadcast %cst_5 : f32 to vector<16x1024xf32>
    %8 = arith.maximumf %6, %7 : vector<16x1024xf32>
    %9 = arith.truncf %8 : vector<16x1024xf32> to vector<16x1024xbf16>
    %c0_6 = arith.constant 0 : index
    %c0_7 = arith.constant 0 : index
    %10 = vector.load %arg4[%c0_6, %c0_7] : memref<1024x512xbf16, #tpu.memory_space<vmem>>, vector<1024x512xbf16>
    %cst_8 = arith.constant dense<0.000000e+00> : vector<16x512xf32>
    %11 = tpu.matmul %9, %10, %cst_8 {dimension_numbers = #tpu.dot_dimension_numbers<[1], [0], [0], [1], [0, 0, 1, 1], [], []>} : vector<16x1024xbf16>, vector<1024x512xbf16>, vector<16x512xf32> -> vector<16x512xf32>
    %c0_9 = arith.constant 0 : index
    %c0_10 = arith.constant 0 : index
    %12 = vector.load %arg5[%c0_9, %c0_10] : memref<1x512xf32, #tpu.memory_space<vmem>>, vector<1x512xf32>
    %13 = vector.broadcast %12 : vector<1x512xf32> to vector<16x512xf32>
    %14 = arith.addf %11, %13 : vector<16x512xf32>
    %cst_11 = arith.constant 0.000000e+00 : f32
    %15 = vector.broadcast %cst_11 : f32 to vector<16x512xf32>
    %16 = arith.maximumf %14, %15 : vector<16x512xf32>
    %17 = arith.truncf %16 : vector<16x512xf32> to vector<16x512xbf16>
    %c0_12 = arith.constant 0 : index
    %c0_13 = arith.constant 0 : index
    %18 = vector.load %arg6[%c0_12, %c0_13] : memref<512x256xbf16, #tpu.memory_space<vmem>>, vector<512x256xbf16>
    %cst_14 = arith.constant dense<0.000000e+00> : vector<16x256xf32>
    %19 = tpu.matmul %17, %18, %cst_14 {dimension_numbers = #tpu.dot_dimension_numbers<[1], [0], [0], [1], [0, 0, 1, 1], [], []>} : vector<16x512xbf16>, vector<512x256xbf16>, vector<16x256xf32> -> vector<16x256xf32>
    %c0_15 = arith.constant 0 : index
    %c0_16 = arith.constant 0 : index
    %20 = vector.load %arg7[%c0_15, %c0_16] : memref<1x256xf32, #tpu.memory_space<vmem>>, vector<1x256xf32>
    %21 = vector.broadcast %20 : vector<1x256xf32> to vector<16x256xf32>
    %22 = arith.addf %19, %21 : vector<16x256xf32>
    %cst_17 = arith.constant 0.000000e+00 : f32
    %23 = vector.broadcast %cst_17 : f32 to vector<16x256xf32>
    %24 = arith.maximumf %22, %23 : vector<16x256xf32>
    %25 = arith.truncf %24 : vector<16x256xf32> to vector<16x256xbf16>
    %c0_18 = arith.constant 0 : index
    %c0_19 = arith.constant 0 : index
    %26 = vector.load %arg8[%c0_18, %c0_19] : memref<256x128xbf16, #tpu.memory_space<vmem>>, vector<256x128xbf16>
    %cst_20 = arith.constant dense<0.000000e+00> : vector<16x128xf32>
    %27 = tpu.matmul %25, %26, %cst_20 {dimension_numbers = #tpu.dot_dimension_numbers<[1], [0], [0], [1], [0, 0, 1, 1], [], []>} : vector<16x256xbf16>, vector<256x128xbf16>, vector<16x128xf32> -> vector<16x128xf32>
    %c0_21 = arith.constant 0 : index
    %c0_22 = arith.constant 0 : index
    %28 = vector.load %arg9[%c0_21, %c0_22] : memref<1x128xf32, #tpu.memory_space<vmem>>, vector<1x128xf32>
    %29 = vector.broadcast %28 : vector<1x128xf32> to vector<16x128xf32>
    %30 = arith.addf %27, %29 : vector<16x128xf32>
    %cst_23 = arith.constant 0.000000e+00 : f32
    %31 = vector.broadcast %cst_23 : f32 to vector<16x128xf32>
    %32 = arith.maximumf %30, %31 : vector<16x128xf32>
    %c0_24 = arith.constant 0 : index
    %c0_25 = arith.constant 0 : index
    %33 = vector.load %arg10[%c0_24, %c0_25] : memref<16x128xf32, #tpu.memory_space<vmem>>, vector<16x128xf32>
    tpu.vector_store %arg10[%c0_24, %c0_25], %32 {strides = array<i32>} : memref<16x128xf32, #tpu.memory_space<vmem>>, vector<16x128xf32>,
    return
  }
  func.func @transform_0(%arg0: i32) -> (i32, i32) {
    %c0_i32 = arith.constant 0 : i32
    %c0_i32_0 = arith.constant 0 : i32
    return %arg0, %c0_i32 : i32, i32
  }
  func.func @transform_1(%arg0: i32) -> (i32, i32) {
    %c0_i32 = arith.constant 0 : i32
    %c0_i32_0 = arith.constant 0 : i32
    %c0_i32_1 = arith.constant 0 : i32
    return %c0_i32, %c0_i32_0 : i32, i32
  }
  func.func @transform_2(%arg0: i32) -> (i32, i32) {
    %c0_i32 = arith.constant 0 : i32
    %c0_i32_0 = arith.constant 0 : i32
    %c0_i32_1 = arith.constant 0 : i32
    return %c0_i32, %c0_i32_0 : i32, i32
  }
  func.func @transform_3(%arg0: i32) -> (i32, i32) {
    %c0_i32 = arith.constant 0 : i32
    %c0_i32_0 = arith.constant 0 : i32
    %c0_i32_1 = arith.constant 0 : i32
    return %c0_i32, %c0_i32_0 : i32, i32
  }
  func.func @transform_4(%arg0: i32) -> (i32, i32) {
    %c0_i32 = arith.constant 0 : i32
    %c0_i32_0 = arith.constant 0 : i32
    %c0_i32_1 = arith.constant 0 : i32
    return %c0_i32, %c0_i32_0 : i32, i32
  }
  func.func @transform_5(%arg0: i32) -> (i32, i32) {
    %c0_i32 = arith.constant 0 : i32
    %c0_i32_0 = arith.constant 0 : i32
    %c0_i32_1 = arith.constant 0 : i32
    return %c0_i32, %c0_i32_0 : i32, i32
  }
  func.func @transform_6(%arg0: i32) -> (i32, i32) {
    %c0_i32 = arith.constant 0 : i32
    %c0_i32_0 = arith.constant 0 : i32
    %c0_i32_1 = arith.constant 0 : i32
    return %c0_i32, %c0_i32_0 : i32, i32
  }
  func.func @transform_7(%arg0: i32) -> (i32, i32) {
    %c0_i32 = arith.constant 0 : i32
    %c0_i32_0 = arith.constant 0 : i32
    %c0_i32_1 = arith.constant 0 : i32
    return %c0_i32, %c0_i32_0 : i32, i32
  }
  func.func @transform_8(%arg0: i32) -> (i32, i32) {
    %c0_i32 = arith.constant 0 : i32
    %c0_i32_0 = arith.constant 0 : i32
    %c0_i32_1 = arith.constant 0 : i32
    return %c0_i32, %c0_i32_0 : i32, i32
  }
  func.func @transform_9(%arg0: i32) -> (i32, i32) {
    %c0_i32 = arith.constant 0 : i32
    %c0_i32_0 = arith.constant 0 : i32
    return %arg0, %c0_i32 : i32, i32
  }
}

</mosaic_0001>

<bundles_post_ra>
// kernel: metanet_forward_folded.1
= control target key start
LH: loop header
LB: loop body
LE: loop exit
PB: predicated region body
PF: predicated region fallthrough
CT: control target
= control target key end

     0   :  { %14 = vsyncpa [#allocation3], 0  ;;  %s4409_s0 = inlined_call_operand.vmem [shape: f32[16,51], index: 0, kind: input, shape index: {}]   ;;  %s4410_s1 = inlined_call_operand.hbm [shape: bf16[51,1024], index: 1, kind: input, shape index: {}]   ;;  %s4411_s2 = inlined_call_operand.vmem [shape: f32[1,1024], index: 2, kind: input, shape index: {}]   ;;  %s4412_s3 = inlined_call_operand.hbm [shape: bf16[1024,512], index: 3, kind: input, shape index: {}]   ;;  %s4413_s4 = inlined_call_operand.vmem [shape: f32[1,512], index: 4, kind: input, shape index: {}]   ;;  %s4414_s5 = inlined_call_operand.hbm [shape: bf16[512,256], index: 5, kind: input, shape index: {}]   ;;  %s4415_s6 = inlined_call_operand.vmem [shape: f32[1,256], index: 6, kind: input, shape index: {}]   ;;  %s4416_s7 = inlined_call_operand.hbm [shape: bf16[256,128], index: 7, kind: input, shape index: {}]   ;;  %s4417_s8 = inlined_call_operand.vmem [shape: f32[1,128], index: 8, kind: input, shape index: {}]   ;;  %s4418_s9 = inlined_call_operand.vmem [shape: f32[16,128], index: 9, kind: output, shape index: {}]  }
   0x1   :  { %15 = vsyncpa [#allocation5], 0 }
   0x2   :  { %16 = vsyncpa [#allocation8], 0  ;;  %s4165_s30 = smov [#allocation4]   ;;  %s4071_s13 = scalar_lea.hbm %s4412_s3, 32768 }
   0x3   :  { %s38_s10 = sshll.u32 %s4165_s30, 4  ;;  %p4072_p0 = scmp.ne.s32.totalorder %s4412_s3, %s4071_s13  ;;  %s39_s10 = int_to_ptr.vmem [resolvable:$true] %s38_s10 }
   0x4   :  { %p4075_p1 = scmp.lt.u32.totalorder %s4071_s13, %s4412_s3 }
   0x6   :  { %p4077_p2 = pnand %p4075_p1, %p4072_p0 }
   0x8   :  { %4080 = shalt.err (!%p4077_p2)
}
   0x9   :  { %s4081_s18 = scalar_lea.vmem %s39_s10, 32768  ;;  %p4086_p4 = scmp.lt.s32.totalorder %s39_s10, %s39_s10 }
   0xa   :  { %p4082_p3 = scmp.ne.s32.totalorder %s39_s10, %s4081_s18  ;;  %p4087_p5 = scmp.lt.s32.totalorder %s4081_s18, %s4081_s18 }
   0xc   :  { %p4088_p6 = por %p4087_p5, %p4086_p4 }
   0xe   :  { %p4089_p7 = pnand %p4088_p6, %p4082_p3 }
  0x10   :  { %4092 = shalt.err (!%p4089_p7)
}
  0x11   :  { %s4166_s19 = smov 256   ;;  %s4167_s20 = smov 16  }
  0x12   :  { %44 = dma.hbm_to_vmem [thread:$0]  %s4412_s3, 32768, %s39_s10, [#allocation5], %s4166_s19, %s4166_s19, %s4167_s20  }
  0x13   :  { %s4168_s23 = smov [#allocation2]   ;;  %s4093_s27 = scalar_lea.hbm %s4410_s1, 3584 }
  0x14   :  { %s24_s24 = sshll.u32 %s4168_s23, 4  ;;  %p4094_p8 = scmp.ne.s32.totalorder %s4410_s1, %s4093_s27  ;;  %s25_s24 = int_to_ptr.vmem [resolvable:$true] %s24_s24 }
  0x15   :  { %p4097_p9 = scmp.lt.u32.totalorder %s4093_s27, %s4410_s1 }
  0x17   :  { %p4099_p10 = pnand %p4097_p9, %p4094_p8 }
  0x19   :  { %4102 = shalt.err (!%p4099_p10)
}
  0x1a   :  { %s4103_s12 = scalar_lea.vmem %s25_s24, 3584  ;;  %p4108_p12 = scmp.lt.s32.totalorder %s25_s24, %s25_s24 }
  0x1b   :  { %p4104_p11 = scmp.ne.s32.totalorder %s25_s24, %s4103_s12  ;;  %p4109_p13 = scmp.lt.s32.totalorder %s4103_s12, %s4103_s12 }
  0x1d   :  { %p4110_p0 = por %p4109_p13, %p4108_p12 }
  0x1f   :  { %p4111_p1 = pnand %p4110_p0, %p4104_p11 }
  0x21   :  { %4114 = shalt.err (!%p4111_p1)
}
  0x22   :  { %s4169_s3 = smov 512   ;;  %s4170_s10 = smov 32  }
  0x23   :  { %30 = dma.hbm_to_vmem [thread:$0]  %s4410_s1, 3584, %s25_s24, [#allocation3], %s4169_s3, %s4169_s3, %s4170_s10  }
  0x24   :  { %s4171_s15 = smov [#allocation6]   ;;  %s4115_s19 = scalar_lea.hbm %s4414_s5, 8192 }
  0x25   :  { %s52_s16 = sshll.u32 %s4171_s15, 4  ;;  %p4116_p2 = scmp.ne.s32.totalorder %s4414_s5, %s4115_s19  ;;  %s53_s16 = int_to_ptr.vmem [resolvable:$true] %s52_s16 }
  0x26   :  { %p4119_p3 = scmp.lt.u32.totalorder %s4115_s19, %s4414_s5 }
  0x28   :  { %p4121_p4 = pnand %p4119_p3, %p4116_p2 }
  0x2a   :  { %4124 = shalt.err (!%p4121_p4)
}
  0x2b   :  { %s4125_s25 = scalar_lea.vmem %s53_s16, 8192  ;;  %p4130_p6 = scmp.lt.s32.totalorder %s53_s16, %s53_s16 }
  0x2c   :  { %p4126_p5 = scmp.ne.s32.totalorder %s53_s16, %s4125_s25  ;;  %p4131_p7 = scmp.lt.s32.totalorder %s4125_s25, %s4125_s25 }
  0x2e   :  { %p4132_p8 = por %p4131_p7, %p4130_p6 }
  0x30   :  { %p4133_p9 = pnand %p4132_p8, %p4126_p5 }
  0x32   :  { %4136 = shalt.err (!%p4133_p9)
}
  0x33   :  { %s4172_s1 = smov 128   ;;  %s4173_s24 = smov 8  }
  0x34   :  { %58 = dma.hbm_to_vmem [thread:$0]  %s4414_s5, 8192, %s53_s16, [#allocation5], %s4172_s1, %s4172_s1, %s4173_s24  }
  0x35   :  { %s4174_s28 = smov [#allocation7]   ;;  %s4137_s12 = scalar_lea.hbm %s4416_s7, 2048 }
  0x36   :  { %s66_s29 = sshll.u32 %s4174_s28, 4  ;;  %p4138_p10 = scmp.ne.s32.totalorder %s4416_s7, %s4137_s12  ;;  %s67_s29 = int_to_ptr.vmem [resolvable:$true] %s66_s29 }
  0x37   :  { %p4141_p11 = scmp.lt.u32.totalorder %s4137_s12, %s4416_s7 }
  0x39   :  { %p4143_p12 = pnand %p4141_p11, %p4138_p10 }
  0x3b   :  { %4146 = shalt.err (!%p4143_p12)
}
  0x3c   :  { %s4147_s15 = scalar_lea.vmem %s67_s29, 2048  ;;  %p4152_p0 = scmp.lt.s32.totalorder %s67_s29, %s67_s29 }
  0x3d   :  { %p4148_p13 = scmp.ne.s32.totalorder %s67_s29, %s4147_s15  ;;  %p4153_p1 = scmp.lt.s32.totalorder %s4147_s15, %s4147_s15 }
  0x3f   :  { %p4154_p2 = por %p4153_p1, %p4152_p0 }
  0x41   :  { %p4155_p3 = pnand %p4154_p2, %p4148_p13 }
  0x43   :  { %4158 = shalt.err (!%p4155_p3)
}
  0x44   :  { %s4175_s5 = smov 64   ;;  %s4176_s16 = smov 4  }
  0x45   :  { %72 = dma.hbm_to_vmem [thread:$0]  %s4416_s7, 2048, %s67_s29, [#allocation8], %s4175_s5, %s4175_s5, %s4176_s16  }
  0x46   :  { %4159 = dma.done.wait [#allocation3], 3584  }
  0x47   :  { %4160 = vsyncadd [#allocation3], 4294963712 }
  0x48   :  { %4161 = dma.done.wait [#allocation5], 40960  }
  0x49   :  { %4162 = vsyncadd [#allocation5], 4294926336 }
  0x4a   :  { %4163 = dma.done.wait [#allocation8], 2048  }
  0x4b   :  { %4164 = vsyncadd [#allocation8], 4294965248  ;;  %v4177_v0 = vmov 0   ;;  %v91_v1 = vld [vmem:[#allocation2] sm:$0xff]  ;;  %vm305_vm0 = vcmask 1040384   ;;  %vm306_vm1 = vcmask 1041408  }
  0x4c   :  { %365 = vmatprep.mubr.bf16.mxu0 %v4177_v0  ;;  %494 = vmatprep.mubr.bf16.mxu1 %v4177_v0  ;;  %v95_v2 = vld [vmem:[#allocation2 + $0x20] sm:$0xff]  ;;  %v4178_v11 = vmov 65535   ;;  %v94_v17 = vld [vmem:[#allocation2 + $0x18] sm:$0xff]  ;;  %v92_v24 = vld [vmem:[#allocation2 + $0x8] sm:$0xff]  ;;  %vm301_vm2 = vcmask 416768  }
  0x4d   :  { %v99_v3 = vld [vmem:[#allocation2 + $0x40] sm:$0xff]  ;;  %v3119_v4 = vcombine.high %v91_v1, %v95_v2  ;;  %v3118_v5 = vcombine.low %v91_v1, %v95_v2  ;;  %v307_v12 = vsel %vm305_vm0, 4294967295, %v4178_v11  ;;  %v98_v20 = vld [vmem:[#allocation2 + $0x38] sm:$0xff]  ;;  %v96_v25 = vld [vmem:[#allocation2 + $0x28] sm:$0xff] }
  0x4e   :  { %v103_v6 = vld [vmem:[#allocation2 + $0x60] sm:$0xff]  ;;  %v4279_v16 = vsel %vm306_vm1, %v307_v12, 0  ;;  %v102_v21 = vld [vmem:[#allocation2 + $0x58] sm:$0xff]  ;;  %v3125_v26 = vcombine.high %v94_v17, %v98_v20  ;;  %v3124_v27 = vcombine.low %v94_v17, %v98_v20  ;;  %v89_v34 = vld [vmem:[%s4409_s0 + $0x8] sm:$0xff]  ;;  %v3121_v36 = vcombine.high %v92_v24, %v96_v25 }
  0x4f   :  { %v3127_v7 = vcombine.high %v99_v3, %v103_v6  ;;  %v107_v8 = vld [vmem:[#allocation2 + $0x80] sm:$0xff]  ;;  %333 = vmatprep.subr.bf16.mxu0 %v3119_v4  ;;  %v3126_v13 = vcombine.low %v99_v3, %v103_v6  ;;  %v106_v22 = vld [vmem:[#allocation2 + $0x78] sm:$0xff]  ;;  %v100_v37 = vld [vmem:[#allocation2 + $0x48] sm:$0xff]  ;;  %v3120_v42 = vcombine.low %v92_v24, %v96_v25 }
  0x50   :  { %v111_v9 = vld [vmem:[#allocation2 + $0xa0] sm:$0xff]  ;;  %334 = vmatpush1.bf16.msra.mxu0 %v3118_v5  ;;  %v110_v28 = vld [vmem:[#allocation2 + $0x98] sm:$0xff]  ;;  %v3133_v29 = vcombine.high %v102_v21, %v106_v22  ;;  %462 = vmatprep.subr.bf16.mxu1 %v3125_v26  ;;  %v3132_v35 = vcombine.low %v102_v21, %v106_v22  ;;  %v104_v39 = vld [vmem:[#allocation2 + $0x68] sm:$0xff] }
  0x51   :  { %v115_v10 = vld [vmem:[#allocation2 + $0xc0] sm:$0x33]  ;;  %335 = vmatprep.subr.bf16.mxu0 %v3127_v7  ;;  %v3135_v14 = vcombine.high %v107_v8, %v111_v9  ;;  %v3134_v18 = vcombine.low %v107_v8, %v111_v9  ;;  %v114_v30 = vld [vmem:[#allocation2 + $0xb8] sm:$0xff]  ;;  %463 = vmatpush1.bf16.msra.mxu1 %v3124_v27  ;;  %v3129_v43 = vcombine.high %v100_v37, %v104_v39  ;;  %v108_v44 = vld [vmem:[#allocation2 + $0x88] sm:$0xff] }
  0x52   :  { %v3143_v15 = vcombine.high %v115_v10, %v115_v10  ;;  %v3142_v19 = vcombine.low %v115_v10, %v115_v10  ;;  %v118_v31 = vld [vmem:[#allocation2 + $0xd8] sm:$0x33]  ;;  %v88_v33 = vld [vmem:[%s4409_s0] sm:$0xff]  ;;  %464 = vmatprep.subr.bf16.mxu1 %v3133_v29  ;;  %v3141_v38 = vcombine.high %v110_v28, %v114_v30  ;;  %v112_v45 = vld [vmem:[#allocation2 + $0xa8] sm:$0xff]  ;;  %v3140_v46 = vcombine.low %v110_v28, %v114_v30 }
  0x53   :  { %v3149_v40 = vcombine.high %v118_v31, %v118_v31  ;;  %v4289_v41 = vpack.c.bf16 %v89_v34, %v88_v33  ;;  %v3148_v47 = vcombine.low %v118_v31, %v118_v31  ;;  %v116_v48 = vld [vmem:[#allocation2 + $0xc8] sm:$0x33]  ;;  %v3128_v50 = vcombine.low %v100_v37, %v104_v39  ;;  %v3577_v54 = vld [vmem:[#allocation4 + $0x4] ss:$16 sps:$4 sm:$0xff]   ;;  %v3575_v60 = vld [vmem:[#allocation4] ss:$16 sps:$4 sm:$0xff]  }
  0x54   :  { %336 = vmatpush1.bf16.msra.mxu0 %v3126_v13  ;;  %v313_v23 = vand.u32 %v3143_v15, %v4279_v16  ;;  %v310_v32 = vand.u32 %v3142_v19, %v4279_v16  ;;  %v3137_v51 = vcombine.high %v108_v44, %v112_v45  ;;  %v3145_v52 = vcombine.high %v116_v48, %v116_v48  ;;  %v93_v57 = vld [vmem:[#allocation2 + $0x10] sm:$0xff] }
  0x55   :  { %337 = vmatprep.subr.bf16.mxu0 %v3135_v14  ;;  %465 = vmatpush1.bf16.msra.mxu1 %v3132_v35  ;;  %v331_v49 = vand.u32 %v3149_v40, %v4279_v16  ;;  %v328_v53 = vand.u32 %v3148_v47, %v4279_v16  ;;  %v3136_v55 = vcombine.low %v108_v44, %v112_v45  ;;  %v97_v59 = vld [vmem:[#allocation2 + $0x30] sm:$0xff] }
  0x56   :  { %466 = vmatprep.subr.bf16.mxu1 %v3141_v38  ;;  %v3144_v56 = vcombine.low %v116_v48, %v116_v48  ;;  %v319_v58 = vand.u32 %v3145_v52, %v4279_v16  ;;  %v3580_v61 = vld [vmem:[#allocation4 + $0x24] ss:$16 sps:$4 sm:$0xff]   ;;  %v3123_v1 = vcombine.high %v93_v57, %v97_v59  ;;  %v3578_v3 = vld [vmem:[#allocation4 + $0x20] ss:$16 sps:$4 sm:$0xff]   ;;  %v3122_v5 = vcombine.low %v93_v57, %v97_v59 }
  0x57   :  { %v101_v63 = vld [vmem:[#allocation2 + $0x50] sm:$0xff] }
  0x58   :  { %338 = vmatpush1.bf16.msra.mxu0 %v3134_v18  ;;  %v316_v62 = vand.u32 %v3144_v56, %v4279_v16  ;;  %v105_v2 = vld [vmem:[#allocation2 + $0x70] sm:$0xff] }
  0x59   :  { %339 = vmatprep.subr.bf16.mxu0 %v313_v23  ;;  %467 = vmatpush1.bf16.msra.mxu1 %v3140_v46  ;;  %v3583_v4 = vld [vmem:[#allocation4 + $0x44] ss:$16 sps:$4 sm:$0xff]   ;;  %v3131_v8 = vcombine.high %v101_v63, %v105_v2  ;;  %v3581_v10 = vld [vmem:[#allocation4 + $0x40] ss:$16 sps:$4 sm:$0xff]   ;;  %v3130_v12 = vcombine.low %v101_v63, %v105_v2 }
  0x5a   :  { %468 = vmatprep.subr.bf16.mxu1 %v331_v49  ;;  %v109_v6 = vld [vmem:[#allocation2 + $0x90] sm:$0xff] }
  0x5b   :  { %v113_v7 = vld [vmem:[#allocation2 + $0xb0] sm:$0xff] }
  0x5c   :  { %340 = vmatpush1.bf16.msra.mxu0 %v310_v32  ;;  %v117_v9 = vld [vmem:[#allocation2 + $0xd0] sm:$0x33]  ;;  %v3139_v13 = vcombine.high %v109_v6, %v113_v7  ;;  %v3138_v18 = vcombine.low %v109_v6, %v113_v7 }
  0x5d   :  { %376 = vmatprep.subr.bf16.mxu0 %v3121_v36  ;;  %469 = vmatpush1.bf16.msra.mxu1 %v328_v53  ;;  %v3586_v11 = vld [vmem:[#allocation4 + $0x64] ss:$16 sps:$4 sm:$0xff]   ;;  %v3147_v14 = vcombine.high %v117_v9, %v117_v9  ;;  %v3584_v15 = vld [vmem:[#allocation4 + $0x60] ss:$16 sps:$4 sm:$0xff]   ;;  %v3146_v19 = vcombine.low %v117_v9, %v117_v9 }
  0x5e   :  { %2087 = vmatprep.subr.bf16.mxu1 %v3577_v54  ;;  %v3589_v17 = vld [vmem:[#allocation4 + $0x84] ss:$16 sps:$4 sm:$0xff]   ;;  %v3587_v21 = vld [vmem:[#allocation4 + $0x80] ss:$16 sps:$4 sm:$0xff]  }
  0x5f   :  { %3150 = vmatmul.mubr.msk.bf16.vlgmr.msra.gmra.mrb[0].mxu0 %vm301_vm2, %v4289_v41  ;;  %v325_v20 = vand.u32 %v3147_v14, %v4279_v16  ;;  %v3595_v22 = vld [vmem:[#allocation4 + $0xa4] ss:$16 sps:$4 sm:$0xff]   ;;  %v3593_v24 = vld [vmem:[#allocation4 + $0xa0] ss:$16 sps:$4 sm:$0xff]   ;;  %v121_v14 = vlaneseq }
  0x60   :  { %377 = vmatpush1.bf16.msra.mxu0 %v3120_v42  ;;  %408 = vmatprep.mubr.bf16.mxu0 %v4177_v0  ;;  %v3592_v23 = vld [vmem:[#allocation4 + $0x204] ss:$16 sps:$4 sm:$0xff]   ;;  %v3590_v26 = vld [vmem:[#allocation4 + $0x200] ss:$16 sps:$4 sm:$0xff]  }
  0x61   :  { %378 = vmatprep.subr.bf16.mxu0 %v3129_v43  ;;  %3153 = vmatmul.mubr.msk.bf16.vlgmr.msra.gmra.mrb[0].mxu1 %vm301_vm2, %v4289_v41  ;;  %v3601_v25 = vld [vmem:[#allocation4 + $0xc4] ss:$16 sps:$4 sm:$0xff]   ;;  %v3599_v28 = vld [vmem:[#allocation4 + $0xc0] ss:$16 sps:$4 sm:$0xff]  }
  0x62   :  { %2088 = vmatpush1.bf16.msra.mxu1 %v3575_v60  ;;  %v3598_v27 = vld [vmem:[#allocation4 + $0x224] ss:$16 sps:$4 sm:$0xff]   ;;  %v3596_v30 = vld [vmem:[#allocation4 + $0x220] ss:$16 sps:$4 sm:$0xff]  }
  0x63   :  { %2089 = vmatprep.subr.bf16.mxu1 %v3580_v61  ;;  %v3607_v29 = vld [vmem:[#allocation4 + $0xe4] ss:$16 sps:$4 sm:$0xff]   ;;  %v3605_v32 = vld [vmem:[#allocation4 + $0xe0] ss:$16 sps:$4 sm:$0xff]  }
  0x64   :  { %379 = vmatpush1.bf16.msra.mxu0 %v3128_v50  ;;  %v3604_v31 = vld [vmem:[#allocation4 + $0x244] ss:$16 sps:$4 sm:$0xff]   ;;  %v3602_v33 = vld [vmem:[#allocation4 + $0x240] ss:$16 sps:$4 sm:$0xff]  }
  0x65   :  { %380 = vmatprep.subr.bf16.mxu0 %v3137_v51  ;;  %v3610_v34 = vld [vmem:[#allocation4 + $0x264] ss:$16 sps:$4 sm:$0xff]   ;;  %v3611_v35 = vld [vmem:[#allocation4 + $0x100] ss:$16 sps:$4 sm:$0xff]  }
  0x66   :  { %2090 = vmatpush1.bf16.msra.mxu1 %v3578_v3  ;;  %v3619_v36 = vld [vmem:[#allocation4 + $0x124] ss:$16 sps:$4 sm:$0xff]   ;;  %v3608_v37 = vld [vmem:[#allocation4 + $0x260] ss:$16 sps:$4 sm:$0xff]  }
  0x67   :  { %2091 = vmatprep.subr.bf16.mxu1 %v3583_v4  ;;  %v3616_v38 = vld [vmem:[#allocation4 + $0x284] ss:$16 sps:$4 sm:$0xff]   ;;  %v3617_v39 = vld [vmem:[#allocation4 + $0x120] ss:$16 sps:$4 sm:$0xff]  }
  0x68   :  { %381 = vmatpush1.bf16.msra.mxu0 %v3136_v55  ;;  %v3625_v40 = vld [vmem:[#allocation4 + $0x144] ss:$16 sps:$4 sm:$0xff]   ;;  %v3623_v43 = vld [vmem:[#allocation4 + $0x140] ss:$16 sps:$4 sm:$0xff]  }
  0x69   :  { %382 = vmatprep.subr.bf16.mxu0 %v319_v58  ;;  %v3622_v42 = vld [vmem:[#allocation4 + $0x2a4] ss:$16 sps:$4 sm:$0xff]   ;;  %v3620_v45 = vld [vmem:[#allocation4 + $0x2a0] ss:$16 sps:$4 sm:$0xff]  }
  0x6a   :  { %2092 = vmatpush1.bf16.msra.mxu1 %v3581_v10  ;;  %v3631_v44 = vld [vmem:[#allocation4 + $0x164] ss:$16 sps:$4 sm:$0xff]   ;;  %v3629_v47 = vld [vmem:[#allocation4 + $0x160] ss:$16 sps:$4 sm:$0xff]  }
  0x6b   :  { %2093 = vmatprep.subr.bf16.mxu1 %v3586_v11  ;;  %v3628_v46 = vld [vmem:[#allocation4 + $0x2c4] ss:$16 sps:$4 sm:$0xff]   ;;  %v3626_v49 = vld [vmem:[#allocation4 + $0x2c0] ss:$16 sps:$4 sm:$0xff]  }
  0x6c   :  { %383 = vmatpush1.bf16.msra.mxu0 %v316_v62  ;;  %v3637_v48 = vld [vmem:[#allocation4 + $0x184] ss:$16 sps:$4 sm:$0xff]   ;;  %v3635_v51 = vld [vmem:[#allocation4 + $0x180] ss:$16 sps:$4 sm:$0xff]  }
  0x6d   :  { %419 = vmatprep.subr.bf16.mxu0 %v3123_v1  ;;  %v3634_v50 = vld [vmem:[#allocation4 + $0x2e4] ss:$16 sps:$4 sm:$0xff]   ;;  %v3632_v53 = vld [vmem:[#allocation4 + $0x2e0] ss:$16 sps:$4 sm:$0xff]  }
  0x6e   :  { %2094 = vmatpush1.bf16.msra.mxu1 %v3584_v15  ;;  %v3643_v52 = vld [vmem:[#allocation4 + $0x1a4] ss:$16 sps:$4 sm:$0xff]   ;;  %v3641_v55 = vld [vmem:[#allocation4 + $0x1a0] ss:$16 sps:$4 sm:$0xff]   ;;  %v4307_v15 = vshrl.u32 %v121_v14, 7 }
  0x6f   :  { %3151 = vmatmul.mubr.msk.bf16.vlgmr.msra.gmra.mrb[4].mxu0 %vm301_vm2, %v4289_v41  ;;  %2095 = vmatprep.subr.bf16.mxu1 %v3589_v17  ;;  %v3640_v54 = vld [vmem:[#allocation4 + $0x304] ss:$16 sps:$4 sm:$0xff]   ;;  %v3638_v56 = vld [vmem:[#allocation4 + $0x300] ss:$16 sps:$4 sm:$0xff]  }
  0x70   :  { %420 = vmatpush1.bf16.msra.mxu0 %v3122_v5  ;;  %451 = vmatprep.mubr.bf16.mxu0 %v4177_v0  ;;  %v322_v0 = vand.u32 %v3146_v19, %v4279_v16  ;;  %v3613_v16 = vld [vmem:[#allocation4 + $0x104] ss:$16 sps:$4 sm:$0xff]   ;;  %v3644_v58 = vld [vmem:[#allocation4 + $0x320] ss:$16 sps:$4 sm:$0xff]   ;;  %v3664_v5 = vld [vmem:[#allocation4 + $0xc] ss:$16 sps:$4 sm:$0xff]  }
  0x71   :  { %421 = vmatprep.subr.bf16.mxu0 %v3131_v8  ;;  %v3646_v57 = vld [vmem:[#allocation4 + $0x324] ss:$16 sps:$4 sm:$0xff]   ;;  %v3647_v61 = vld [vmem:[#allocation4 + $0x1c0] ss:$16 sps:$4 sm:$0xff]   ;;  %v4310_v17 = vsub.s32 0, %v4307_v15  ;;  %v4318_v19 = vsub.s32 1, %v4307_v15 }
  0x72   :  { %2096 = vmatpush1.bf16.msra.mxu1 %v3587_v21  ;;  %v3649_v59 = vld [vmem:[#allocation4 + $0x1c4] ss:$16 sps:$4 sm:$0xff]   ;;  %v3650_v62 = vld [vmem:[#allocation4 + $0x340] ss:$16 sps:$4 sm:$0xff]  }
  0x73   :  { %2097 = vmatprep.subr.bf16.mxu1 %v3595_v22  ;;  %v3652_v60 = vld [vmem:[#allocation4 + $0x344] ss:$16 sps:$4 sm:$0xff]   ;;  %v3653_v2 = vld [vmem:[#allocation4 + $0x1e0] ss:$16 sps:$4 sm:$0xff]  }
  0x74   :  { %422 = vmatpush1.bf16.msra.mxu0 %v3130_v12  ;;  %v3655_v63 = vld [vmem:[#allocation4 + $0x1e4] ss:$16 sps:$4 sm:$0xff]   ;;  %v3656_v3 = vld [vmem:[#allocation4 + $0x360] ss:$16 sps:$4 sm:$0xff]  }
  0x75   :  { %423 = vmatprep.subr.bf16.mxu0 %v3139_v13  ;;  %v3658_v1 = vld [vmem:[#allocation4 + $0x364] ss:$16 sps:$4 sm:$0xff]   ;;  %v3659_v6 = vld [vmem:[#allocation4 + $0x380] ss:$16 sps:$4 sm:$0xff]  }
  0x76   :  { %2098 = vmatpush1.bf16.msra.mxu1 %v3593_v24  ;;  %v3661_v4 = vld [vmem:[#allocation4 + $0x384] ss:$16 sps:$4 sm:$0xff]   ;;  %v3665_v7 = vld [vmem:[#allocation4 + $0x3a0] ss:$16 sps:$4 sm:$0xff]  }
  0x77   :  { %2099 = vmatprep.subr.bf16.mxu1 %v3601_v25  ;;  %v3667_v8 = vld [vmem:[#allocation4 + $0x3a4] ss:$16 sps:$4 sm:$0xff]   ;;  %v3671_v10 = vld [vmem:[#allocation4 + $0x3c0] ss:$16 sps:$4 sm:$0xff]  }
  0x78   :  { %424 = vmatpush1.bf16.msra.mxu0 %v3138_v18  ;;  %v3673_v9 = vld [vmem:[#allocation4 + $0x3c4] ss:$16 sps:$4 sm:$0xff]   ;;  %v3677_v12 = vld [vmem:[#allocation4 + $0x3e0] ss:$16 sps:$4 sm:$0xff]  }
  0x79   :  { %425 = vmatprep.subr.bf16.mxu0 %v325_v20  ;;  %v3679_v11 = vld [vmem:[#allocation4 + $0x3e4] ss:$16 sps:$4 sm:$0xff]   ;;  %v3683_v14 = vld [vmem:[#allocation4 + $0x400] ss:$16 sps:$4 sm:$0xff]  }
  0x7a   :  { %2100 = vmatpush1.bf16.msra.mxu1 %v3599_v28  ;;  %v3685_v13 = vld [vmem:[#allocation4 + $0x404] ss:$16 sps:$4 sm:$0xff]  }
  0x7b   :  { %2101 = vmatprep.subr.bf16.mxu1 %v3607_v29  ;;  %v4315_v18 = vld [vmem:[%s4411_s2] sm:$0xff] }
  0x7c   :  { %426 = vmatpush1.bf16.msra.mxu0 %v322_v0  ;;  %v124_v20 = vrot.slane %v4315_v18, %v4310_v17  ;;  %v128_v21 = vrot.slane %v4315_v18, %v4318_v19 }
  0x7d   :  { %2130 = vmatprep.subr.bf16.mxu0 %v3592_v23 }
  0x7e   :  { %2102 = vmatpush1.bf16.msra.mxu1 %v3605_v32 }
  0x7f   :  { %3152 = vmatmul.mubr.msk.bf16.vlgmr.msra.gmra.mrb[8].mxu0 %vm301_vm2, %v4289_v41  ;;  %2103 = vmatprep.subr.bf16.mxu1 %v3613_v16  ;;  %v3614_v41 = vld [vmem:[#allocation4 + $0x280] ss:$16 sps:$4 sm:$0xff]  }
  0x80   :  { %2131 = vmatpush1.bf16.msra.mxu0 %v3590_v26 }
  0x81   :  { %2132 = vmatprep.subr.bf16.mxu0 %v3598_v27 }
  0x82   :  { %2104 = vmatpush1.bf16.msra.mxu1 %v3611_v35  ;;  %v3670_v35 = vld [vmem:[#allocation4 + $0x2c] ss:$16 sps:$4 sm:$0xff]  }
  0x83   :  { %2105 = vmatprep.subr.bf16.mxu1 %v3619_v36  ;;  %v131_v36 = vsub.s32 2, %v4307_v15 }
  0x84   :  { %2133 = vmatpush1.bf16.msra.mxu0 %v3596_v30 }
  0x85   :  { %2134 = vmatprep.subr.bf16.mxu0 %v3604_v31 }
  0x86   :  { %2106 = vmatpush1.bf16.msra.mxu1 %v3617_v39  ;;  %v132_v39 = vrot.slane %v4315_v18, %v131_v36 }
  0x87   :  { %2107 = vmatprep.subr.bf16.mxu1 %v3625_v40  ;;  %v3676_v40 = vld [vmem:[#allocation4 + $0x4c] ss:$16 sps:$4 sm:$0xff]  }
  0x88   :  { %2135 = vmatpush1.bf16.msra.mxu0 %v3602_v33 }
  0x89   :  { %2136 = vmatprep.subr.bf16.mxu0 %v3610_v34  ;;  %v3662_v34 = vld [vmem:[#allocation4 + $0x8] ss:$16 sps:$4 sm:$0xff]  }
  0x8a   :  { %2108 = vmatpush1.bf16.msra.mxu1 %v3623_v43 }
  0x8b   :  { %2109 = vmatprep.subr.bf16.mxu1 %v3631_v44 }
  0x8c   :  { %2137 = vmatpush1.bf16.msra.mxu0 %v3608_v37  ;;  %v135_v37 = vsub.s32 3, %v4307_v15 }
  0x8d   :  { %2138 = vmatprep.subr.bf16.mxu0 %v3616_v38  ;;  %v3668_v38 = vld [vmem:[#allocation4 + $0x28] ss:$16 sps:$4 sm:$0xff]  }
  0x8e   :  { %2110 = vmatpush1.bf16.msra.mxu1 %v3629_v47  ;;  %v151_v47 = vsub.s32 7, %v4307_v15 }
  0x8f   :  { %2111 = vmatprep.subr.bf16.mxu1 %v3637_v48 }
  0x90   :  { %2139 = vmatpush1.bf16.msra.mxu0 %v3614_v41  ;;  %v136_v41 = vrot.slane %v4315_v18, %v135_v37 }
  0x91   :  { %2140 = vmatprep.subr.bf16.mxu0 %v3622_v42  ;;  %v147_v42 = vsub.s32 6, %v4307_v15 }
  0x92   :  { %2112 = vmatpush1.bf16.msra.mxu1 %v3635_v51  ;;  %v3682_v51 = vld [vmem:[#allocation4 + $0x6c] ss:$16 sps:$4 sm:$0xff]  }
  0x93   :  { %2113 = vmatprep.subr.bf16.mxu1 %v3643_v52 }
  0x94   :  { %2141 = vmatpush1.bf16.msra.mxu0 %v3620_v45  ;;  %v3674_v45 = vld [vmem:[#allocation4 + $0x48] ss:$16 sps:$4 sm:$0xff]  }
  0x95   :  { %2142 = vmatprep.subr.bf16.mxu0 %v3628_v46  ;;  %v148_v46 = vrot.slane %v4315_v18, %v147_v42 }
  0x96   :  { %2114 = vmatpush1.bf16.msra.mxu1 %v3641_v55 }
  0x97   :  { %2115 = vmatprep.subr.bf16.mxu1 %v3649_v59 }
  0x98   :  { %2143 = vmatpush1.bf16.msra.mxu0 %v3626_v49 }
  0x99   :  { %2144 = vmatprep.subr.bf16.mxu0 %v3634_v50 }
  0x9a   :  { %2116 = vmatpush1.bf16.msra.mxu1 %v3647_v61 }
  0x9b   :  { %2117 = vmatprep.subr.bf16.mxu1 %v3655_v63 }
  0x9c   :  { %2145 = vmatpush1.bf16.msra.mxu0 %v3632_v53 }
  0x9d   :  { %2146 = vmatprep.subr.bf16.mxu0 %v3640_v54 }
  0x9e   :  { %2118 = vmatpush1.bf16.msra.mxu1 %v3653_v2 }
  0x9f   :  { %2259 = vmatprep.subr.bf16.mxu1 %v3664_v5  ;;  %v3688_v5 = vld [vmem:[#allocation4 + $0x8c] ss:$16 sps:$4 sm:$0xff]  }
  0xa0   :  { %2147 = vmatpush1.bf16.msra.mxu0 %v3638_v56  ;;  %v152_v56 = vrot.slane %v4315_v18, %v151_v47 }
  0xa1   :  { %2148 = vmatprep.subr.bf16.mxu0 %v3646_v57 }
  0xa4   :  { %2149 = vmatpush1.bf16.msra.mxu0 %v3644_v58 }
  0xa5   :  { %2150 = vmatprep.subr.bf16.mxu0 %v3652_v60 }
  0xa8   :  { %2151 = vmatpush1.bf16.msra.mxu0 %v3650_v62 }
  0xa9   :  { %2152 = vmatprep.subr.bf16.mxu0 %v3658_v1  ;;  %v3680_v1 = vld [vmem:[#allocation4 + $0x68] ss:$16 sps:$4 sm:$0xff]  }
  0xac   :  { %2153 = vmatpush1.bf16.msra.mxu0 %v3656_v3 }
  0xad   :  { %2154 = vmatprep.subr.bf16.mxu0 %v3661_v4 }
  0xb0   :  { %2155 = vmatpush1.bf16.msra.mxu0 %v3659_v6 }
  0xb1   :  { %2156 = vmatprep.subr.bf16.mxu0 %v3667_v8 }
  0xb4   :  { %2157 = vmatpush1.bf16.msra.mxu0 %v3665_v7 }
  0xb5   :  { %2158 = vmatprep.subr.bf16.mxu0 %v3673_v9 }
  0xb8   :  { %2159 = vmatpush1.bf16.msra.mxu0 %v3671_v10 }
  0xb9   :  { %2160 = vmatprep.subr.bf16.mxu0 %v3679_v11 }
  0xbc   :  { %2161 = vmatpush1.bf16.msra.mxu0 %v3677_v12 }
  0xbd   :  { %2173 = vmatprep.subr.bf16.mxu0 %v3685_v13 }
 0x132   :  { %v367_v22 = vpop.f32.mrb[0].mxu0 }
 0x133   :  { %v368_v23 = vadd.f32 %v367_v22, %v124_v20  ;;  %v369_v24 = vpop.f32.mrb[1].mxu0  ;;  %v3694_v22 = vld [vmem:[#allocation4 + $0xac] ss:$16 sps:$4 sm:$0xff]  }
 0x134   :  { %v370_v0 = vadd.f32 %v369_v24, %v128_v21  ;;  %v371_v25 = vpop.f32.mrb[2].mxu0  ;;  %v496_v43 = vpop.f32.mrb[0].mxu1 }
 0x135   :  { %v372_v26 = vadd.f32 %v371_v25, %v124_v20  ;;  %v373_v27 = vpop.f32.mrb[3].mxu0  ;;  %v505_v29 = vmax.f32 %v368_v23, 0.0  ;;  %v498_v48 = vpop.f32.mrb[1].mxu1  ;;  %v497_v55 = vadd.f32 %v496_v43, %v148_v46  ;;  %v3686_v20 = vld [vmem:[#allocation4 + $0x88] ss:$16 sps:$4 sm:$0xff]   ;;  %v139_v23 = vsub.s32 4, %v4307_v15 }
 0x136   :  { %v374_v28 = vadd.f32 %v373_v27, %v128_v21  ;;  %v506_v31 = vmax.f32 %v370_v0, 0.0  ;;  %v500_v52 = vpop.f32.mrb[2].mxu1  ;;  %v499_v3 = vadd.f32 %v498_v48, %v152_v56  ;;  %v3691_v21 = vld [vmem:[#allocation4 + $0x424] ss:$16 sps:$4 sm:$0xff]   ;;  %v143_v0 = vsub.s32 5, %v4307_v15 }
 0x137   :  { %v513_v30 = vmax.f32 %v372_v26, 0.0  ;;  %v501_v57 = vadd.f32 %v500_v52, %v148_v46  ;;  %v502_v58 = vpop.f32.mrb[3].mxu1  ;;  %v511_v2 = vmax.f32 %v497_v55, 0.0  ;;  %v3689_v25 = vld [vmem:[#allocation4 + $0x420] ss:$16 sps:$4 sm:$0xff]  }
 0x138   :  { %v514_v32 = vmax.f32 %v374_v28, 0.0  ;;  %v503_v7 = vadd.f32 %v502_v58, %v152_v56  ;;  %v512_v9 = vmax.f32 %v499_v3, 0.0  ;;  %v3692_v26 = vld [vmem:[#allocation4 + $0xa8] ss:$16 sps:$4 sm:$0xff]   ;;  %v3697_v27 = vld [vmem:[#allocation4 + $0x444] ss:$16 sps:$4 sm:$0xff]  }
 0x139   :  { %v4324_v16 = vpack.c.bf16 %v513_v30, %v505_v29  ;;  %v519_v6 = vmax.f32 %v501_v57, 0.0  ;;  %v3700_v28 = vld [vmem:[#allocation4 + $0xcc] ss:$16 sps:$4 sm:$0xff]   ;;  %v140_v29 = vrot.slane %v4315_v18, %v139_v23  ;;  %v144_v30 = vrot.slane %v4315_v18, %v143_v0  ;;  %v3704_v18 = vld [vmem:[#allocation4 + $0xe8] ss:$16 sps:$4 sm:$0xff]   ;;  %v4067_v15 = vld [vmem:[#allocation7 + $0x70] sm:$0xff]  }
 0x13a   :  { %v522_v33 = vpack.c.bf16 %v514_v32, %v506_v31  ;;  %v520_v12 = vmax.f32 %v503_v7, 0.0  ;;  %v3695_v31 = vld [vmem:[#allocation4 + $0x440] ss:$16 sps:$4 sm:$0xff]   ;;  %v3698_v32 = vld [vmem:[#allocation4 + $0xc8] ss:$16 sps:$4 sm:$0xff]  }
 0x13b   :  { %v4341_v11 = vpack.c.bf16 %v519_v6, %v511_v2  ;;  %v3709_v48 = vld [vmem:[#allocation4 + $0x484] ss:$16 sps:$4 sm:$0xff]   ;;  %v3718_v57 = vld [vmem:[#allocation4 + $0x12c] ss:$16 sps:$4 sm:$0xff]   ;;  %v3713_v58 = vld [vmem:[#allocation4 + $0x4a0] ss:$16 sps:$4 sm:$0xff]  }
 0x13c   :  { %2119 = vmatprep.mubr.bf16.mxu1 %v522_v33  ;;  %v4346_v24 = vpack.c.bf16 %v520_v12, %v512_v9  ;;  %v3715_v56 = vld [vmem:[#allocation4 + $0x4a4] ss:$16 sps:$4 sm:$0xff]   ;;  %v3730_v2 = vld [vmem:[#allocation4 + $0x16c] ss:$16 sps:$4 sm:$0xff]   ;;  %v3725_v3 = vld [vmem:[#allocation4 + $0x4e0] ss:$16 sps:$4 sm:$0xff]  }
 0x13d   :  { %2120 = vmatmul.mubr.bf16.vlgmr.msra.gmra.mrb[4].mxu1 %v4324_v16  ;;  %v3736_v6 = vld [vmem:[#allocation4 + $0x18c] ss:$16 sps:$4 sm:$0xff]   ;;  %v3731_v7 = vld [vmem:[#allocation4 + $0x500] ss:$16 sps:$4 sm:$0xff]   ;;  %v3739_v9 = vld [vmem:[#allocation4 + $0x524] ss:$16 sps:$4 sm:$0xff]  }
 0x13e   :  { %2260 = vmatpush1.bf16.msra.mxu1 %v3662_v34  ;;  %2291 = vmatprep.mubr.bf16.mxu1 %v522_v33  ;;  %v3703_v34 = vld [vmem:[#allocation4 + $0x464] ss:$16 sps:$4 sm:$0xff]   ;;  %v3742_v12 = vld [vmem:[#allocation4 + $0x1ac] ss:$16 sps:$4 sm:$0xff]   ;;  %v3743_v23 = vld [vmem:[#allocation4 + $0x540] ss:$16 sps:$4 sm:$0xff]  }
 0x13f   :  { %2261 = vmatprep.subr.bf16.mxu1 %v3670_v35  ;;  %v3706_v35 = vld [vmem:[#allocation4 + $0xec] ss:$16 sps:$4 sm:$0xff]   ;;  %v3746_v0 = vld [vmem:[#allocation4 + $0x1c8] ss:$16 sps:$4 sm:$0xff]  }
 0x142   :  { %2262 = vmatpush1.bf16.msra.mxu1 %v3668_v38  ;;  %v410_v44 = vpop.f32.mrb[4].mxu0 }
 0x143   :  { %v411_v49 = vadd.f32 %v410_v44, %v132_v39  ;;  %v412_v50 = vpop.f32.mrb[5].mxu0  ;;  %2263 = vmatprep.subr.bf16.mxu1 %v3676_v40 }
 0x144   :  { %v413_v53 = vadd.f32 %v412_v50, %v136_v41  ;;  %v414_v54 = vpop.f32.mrb[6].mxu0 }
 0x145   :  { %v507_v59 = vmax.f32 %v411_v49, 0.0  ;;  %v415_v60 = vadd.f32 %v414_v54, %v132_v39  ;;  %v416_v61 = vpop.f32.mrb[7].mxu0  ;;  %v3712_v49 = vld [vmem:[#allocation4 + $0x10c] ss:$16 sps:$4 sm:$0xff]   ;;  %v3710_v54 = vld [vmem:[#allocation4 + $0x108] ss:$16 sps:$4 sm:$0xff]  }
 0x146   :  { %v508_v62 = vmax.f32 %v413_v53, 0.0  ;;  %v417_v63 = vadd.f32 %v416_v61, %v136_v41  ;;  %2264 = vmatpush1.bf16.msra.mxu1 %v3674_v45  ;;  %v3701_v45 = vld [vmem:[#allocation4 + $0x460] ss:$16 sps:$4 sm:$0xff]   ;;  %v3724_v61 = vld [vmem:[#allocation4 + $0x14c] ss:$16 sps:$4 sm:$0xff]  }
 0x147   :  { %v515_v4 = vmax.f32 %v415_v60, 0.0  ;;  %2265 = vmatprep.subr.bf16.mxu1 %v3682_v51  ;;  %v3707_v53 = vld [vmem:[#allocation4 + $0x480] ss:$16 sps:$4 sm:$0xff]   ;;  %v3721_v60 = vld [vmem:[#allocation4 + $0x4c4] ss:$16 sps:$4 sm:$0xff]  }
 0x148   :  { %v516_v8 = vmax.f32 %v417_v63, 0.0  ;;  %v3722_v63 = vld [vmem:[#allocation4 + $0x148] ss:$16 sps:$4 sm:$0xff]  }
 0x149   :  { %v4339_v10 = vpack.c.bf16 %v515_v4, %v507_v59  ;;  %v3716_v59 = vld [vmem:[#allocation4 + $0x128] ss:$16 sps:$4 sm:$0xff]  }
 0x14a   :  { %v4343_v13 = vpack.c.bf16 %v516_v8, %v508_v62  ;;  %2266 = vmatpush1.bf16.msra.mxu1 %v3680_v1  ;;  %v3719_v62 = vld [vmem:[#allocation4 + $0x4c0] ss:$16 sps:$4 sm:$0xff]   ;;  %v3727_v1 = vld [vmem:[#allocation4 + $0x4e4] ss:$16 sps:$4 sm:$0xff]   ;;  %v3728_v4 = vld [vmem:[#allocation4 + $0x168] ss:$16 sps:$4 sm:$0xff]  }
 0x14b   :  { %2267 = vmatprep.subr.bf16.mxu1 %v3688_v5  ;;  %v3733_v5 = vld [vmem:[#allocation4 + $0x504] ss:$16 sps:$4 sm:$0xff]   ;;  %v3734_v8 = vld [vmem:[#allocation4 + $0x188] ss:$16 sps:$4 sm:$0xff]  }
 0x14c   :  { %2162 = vmatprep.mubr.bf16.mxu0 %v4343_v13 }
 0x14d   :  { %2163 = vmatmul.mubr.bf16.vlgmr.msra.gmra.mrb[12].mxu0 %v4339_v10 }
 0x14e   :  { %2174 = vmatpush1.bf16.msra.mxu0 %v3683_v14  ;;  %2268 = vmatpush1.bf16.msra.mxu1 %v3686_v20  ;;  %v3737_v14 = vld [vmem:[#allocation4 + $0x520] ss:$16 sps:$4 sm:$0xff]   ;;  %v3740_v20 = vld [vmem:[#allocation4 + $0x1a8] ss:$16 sps:$4 sm:$0xff]  }
 0x14f   :  { %2175 = vmatprep.subr.bf16.mxu0 %v3691_v21  ;;  %2269 = vmatprep.subr.bf16.mxu1 %v3694_v22  ;;  %v3745_v21 = vld [vmem:[#allocation4 + $0x544] ss:$16 sps:$4 sm:$0xff]   ;;  %v3748_v22 = vld [vmem:[#allocation4 + $0x1cc] ss:$16 sps:$4 sm:$0xff]  }
 0x152   :  { %2176 = vmatpush1.bf16.msra.mxu0 %v3689_v25  ;;  %2270 = vmatpush1.bf16.msra.mxu1 %v3692_v26  ;;  %v453_v33 = vpop.f32.mrb[8].mxu0  ;;  %v3751_v25 = vld [vmem:[#allocation4 + $0x564] ss:$16 sps:$4 sm:$0xff]   ;;  %v3754_v26 = vld [vmem:[#allocation4 + $0x1ec] ss:$16 sps:$4 sm:$0xff]  }
 0x153   :  { %2177 = vmatprep.subr.bf16.mxu0 %v3697_v27  ;;  %2271 = vmatprep.subr.bf16.mxu1 %v3700_v28  ;;  %v454_v38 = vadd.f32 %v453_v33, %v140_v29  ;;  %v455_v39 = vpop.f32.mrb[9].mxu0  ;;  %v3749_v27 = vld [vmem:[#allocation4 + $0x560] ss:$16 sps:$4 sm:$0xff]   ;;  %v3752_v28 = vld [vmem:[#allocation4 + $0x1e8] ss:$16 sps:$4 sm:$0xff]  }
 0x154   :  { %v456_v40 = vadd.f32 %v455_v39, %v144_v30  ;;  %v457_v41 = vpop.f32.mrb[10].mxu0  ;;  %v3763_v33 = vld [vmem:[#allocation4 + $0x5a4] ss:$16 sps:$4 sm:$0xff]  }
 0x155   :  { %v509_v42 = vmax.f32 %v454_v38, 0.0  ;;  %v458_v43 = vadd.f32 %v457_v41, %v140_v29  ;;  %v459_v44 = vpop.f32.mrb[11].mxu0  ;;  %v3757_v29 = vld [vmem:[#allocation4 + $0x584] ss:$16 sps:$4 sm:$0xff]   ;;  %v3764_v38 = vld [vmem:[#allocation4 + $0x228] ss:$16 sps:$4 sm:$0xff]  }
 0x156   :  { %2178 = vmatpush1.bf16.msra.mxu0 %v3695_v31  ;;  %2272 = vmatpush1.bf16.msra.mxu1 %v3698_v32  ;;  %v510_v46 = vmax.f32 %v456_v40, 0.0  ;;  %v460_v47 = vadd.f32 %v459_v44, %v144_v30  ;;  %v3760_v30 = vld [vmem:[#allocation4 + $0x20c] ss:$16 sps:$4 sm:$0xff]   ;;  %v3755_v31 = vld [vmem:[#allocation4 + $0x580] ss:$16 sps:$4 sm:$0xff]  }
 0x157   :  { %2179 = vmatprep.subr.bf16.mxu0 %v3703_v34  ;;  %2273 = vmatprep.subr.bf16.mxu1 %v3706_v35  ;;  %v517_v50 = vmax.f32 %v458_v43, 0.0  ;;  %v3758_v32 = vld [vmem:[#allocation4 + $0x208] ss:$16 sps:$4 sm:$0xff]   ;;  %v3766_v34 = vld [vmem:[#allocation4 + $0x22c] ss:$16 sps:$4 sm:$0xff]  }
 0x158   :  { %v518_v51 = vmax.f32 %v460_v47, 0.0  ;;  %v3761_v35 = vld [vmem:[#allocation4 + $0x5a0] ss:$16 sps:$4 sm:$0xff]   ;;  %v3769_v39 = vld [vmem:[#allocation4 + $0x5c4] ss:$16 sps:$4 sm:$0xff]  }
 0x159   :  { %v4353_v52 = vpack.c.bf16 %v517_v50, %v509_v42  ;;  %v3772_v40 = vld [vmem:[#allocation4 + $0x24c] ss:$16 sps:$4 sm:$0xff]   ;;  %v3767_v41 = vld [vmem:[#allocation4 + $0x5c0] ss:$16 sps:$4 sm:$0xff]   ;;  %v3770_v42 = vld [vmem:[#allocation4 + $0x248] ss:$16 sps:$4 sm:$0xff]  }
 0x15a   :  { %2180 = vmatpush1.bf16.msra.mxu0 %v3701_v45  ;;  %2274 = vmatpush1.bf16.msra.mxu1 %v3704_v18  ;;  %v4355_v55 = vpack.c.bf16 %v518_v51, %v510_v46  ;;  %v3775_v43 = vld [vmem:[#allocation4 + $0x5e4] ss:$16 sps:$4 sm:$0xff]   ;;  %v3778_v44 = vld [vmem:[#allocation4 + $0x26c] ss:$16 sps:$4 sm:$0xff]   ;;  %v3776_v45 = vld [vmem:[#allocation4 + $0x268] ss:$16 sps:$4 sm:$0xff]  }
 0x15b   :  { %2181 = vmatprep.subr.bf16.mxu0 %v3709_v48  ;;  %2275 = vmatprep.subr.bf16.mxu1 %v3712_v49  ;;  %v3781_v18 = vld [vmem:[#allocation4 + $0x604] ss:$16 sps:$4 sm:$0xff]   ;;  %v3779_v46 = vld [vmem:[#allocation4 + $0x600] ss:$16 sps:$4 sm:$0xff]   ;;  %v3782_v47 = vld [vmem:[#allocation4 + $0x288] ss:$16 sps:$4 sm:$0xff]  }
 0x15c   :  { %2205 = vmatprep.mubr.bf16.mxu0 %v4355_v55  ;;  %v3787_v48 = vld [vmem:[#allocation4 + $0x624] ss:$16 sps:$4 sm:$0xff]   ;;  %v3790_v49 = vld [vmem:[#allocation4 + $0x2ac] ss:$16 sps:$4 sm:$0xff]   ;;  %v3785_v50 = vld [vmem:[#allocation4 + $0x620] ss:$16 sps:$4 sm:$0xff]  }
 0x15d   :  { %v3788_v51 = vld [vmem:[#allocation4 + $0x2a8] ss:$16 sps:$4 sm:$0xff]  }
 0x15e   :  { %2182 = vmatpush1.bf16.msra.mxu0 %v3707_v53  ;;  %2276 = vmatpush1.bf16.msra.mxu1 %v3710_v54  ;;  %v3793_v53 = vld [vmem:[#allocation4 + $0x644] ss:$16 sps:$4 sm:$0xff]   ;;  %v3796_v54 = vld [vmem:[#allocation4 + $0x2cc] ss:$16 sps:$4 sm:$0xff]  }
 0x15f   :  { %2183 = vmatprep.subr.bf16.mxu0 %v3715_v56  ;;  %2277 = vmatprep.subr.bf16.mxu1 %v3718_v57  ;;  %v3791_v56 = vld [vmem:[#allocation4 + $0x640] ss:$16 sps:$4 sm:$0xff]   ;;  %v3794_v57 = vld [vmem:[#allocation4 + $0x2c8] ss:$16 sps:$4 sm:$0xff]  }
 0x162   :  { %2184 = vmatpush1.bf16.msra.mxu0 %v3713_v58  ;;  %2278 = vmatpush1.bf16.msra.mxu1 %v3716_v59  ;;  %v3799_v58 = vld [vmem:[#allocation4 + $0x664] ss:$16 sps:$4 sm:$0xff]   ;;  %v3802_v59 = vld [vmem:[#allocation4 + $0x2ec] ss:$16 sps:$4 sm:$0xff]  }
 0x163   :  { %2185 = vmatprep.subr.bf16.mxu0 %v3721_v60  ;;  %2279 = vmatprep.subr.bf16.mxu1 %v3724_v61  ;;  %v3797_v60 = vld [vmem:[#allocation4 + $0x660] ss:$16 sps:$4 sm:$0xff]   ;;  %v3800_v61 = vld [vmem:[#allocation4 + $0x2e8] ss:$16 sps:$4 sm:$0xff]  }
 0x166   :  { %2186 = vmatpush1.bf16.msra.mxu0 %v3719_v62  ;;  %2280 = vmatpush1.bf16.msra.mxu1 %v3722_v63  ;;  %v3805_v62 = vld [vmem:[#allocation4 + $0x684] ss:$16 sps:$4 sm:$0xff]   ;;  %v3808_v63 = vld [vmem:[#allocation4 + $0x30c] ss:$16 sps:$4 sm:$0xff]  }
 0x167   :  { %2187 = vmatprep.subr.bf16.mxu0 %v3727_v1  ;;  %2281 = vmatprep.subr.bf16.mxu1 %v3730_v2  ;;  %v3803_v1 = vld [vmem:[#allocation4 + $0x680] ss:$16 sps:$4 sm:$0xff]   ;;  %v3806_v2 = vld [vmem:[#allocation4 + $0x308] ss:$16 sps:$4 sm:$0xff]  }
 0x16a   :  { %2188 = vmatpush1.bf16.msra.mxu0 %v3725_v3  ;;  %2282 = vmatpush1.bf16.msra.mxu1 %v3728_v4  ;;  %v3811_v3 = vld [vmem:[#allocation4 + $0x6a4] ss:$16 sps:$4 sm:$0xff]   ;;  %v3814_v4 = vld [vmem:[#allocation4 + $0x32c] ss:$16 sps:$4 sm:$0xff]  }
 0x16b   :  { %2189 = vmatprep.subr.bf16.mxu0 %v3733_v5  ;;  %2283 = vmatprep.subr.bf16.mxu1 %v3736_v6  ;;  %v3809_v5 = vld [vmem:[#allocation4 + $0x6a0] ss:$16 sps:$4 sm:$0xff]   ;;  %v3812_v6 = vld [vmem:[#allocation4 + $0x328] ss:$16 sps:$4 sm:$0xff]  }
 0x16e   :  { %2190 = vmatpush1.bf16.msra.mxu0 %v3731_v7  ;;  %2284 = vmatpush1.bf16.msra.mxu1 %v3734_v8  ;;  %v3817_v7 = vld [vmem:[#allocation4 + $0x6c4] ss:$16 sps:$4 sm:$0xff]   ;;  %v3820_v8 = vld [vmem:[#allocation4 + $0x34c] ss:$16 sps:$4 sm:$0xff]  }
 0x16f   :  { %2191 = vmatprep.subr.bf16.mxu0 %v3739_v9  ;;  %2285 = vmatprep.subr.bf16.mxu1 %v3742_v12  ;;  %v3815_v9 = vld [vmem:[#allocation4 + $0x6c0] ss:$16 sps:$4 sm:$0xff]   ;;  %v3818_v12 = vld [vmem:[#allocation4 + $0x348] ss:$16 sps:$4 sm:$0xff]  }
 0x172   :  { %2192 = vmatpush1.bf16.msra.mxu0 %v3737_v14  ;;  %2286 = vmatpush1.bf16.msra.mxu1 %v3740_v20  ;;  %v3823_v14 = vld [vmem:[#allocation4 + $0x6e4] ss:$16 sps:$4 sm:$0xff]   ;;  %v3826_v20 = vld [vmem:[#allocation4 + $0x36c] ss:$16 sps:$4 sm:$0xff]  }
 0x173   :  { %2193 = vmatprep.subr.bf16.mxu0 %v3745_v21  ;;  %2287 = vmatprep.subr.bf16.mxu1 %v3748_v22  ;;  %v3821_v21 = vld [vmem:[#allocation4 + $0x6e0] ss:$16 sps:$4 sm:$0xff]   ;;  %v3824_v22 = vld [vmem:[#allocation4 + $0x368] ss:$16 sps:$4 sm:$0xff]  }
 0x176   :  { %2194 = vmatpush1.bf16.msra.mxu0 %v3743_v23  ;;  %2288 = vmatpush1.bf16.msra.mxu1 %v3746_v0  ;;  %v3829_v23 = vld [vmem:[#allocation4 + $0x704] ss:$16 sps:$4 sm:$0xff]   ;;  %v3832_v0 = vld [vmem:[#allocation4 + $0x38c] ss:$16 sps:$4 sm:$0xff]  }
 0x177   :  { %2195 = vmatprep.subr.bf16.mxu0 %v3751_v25  ;;  %2289 = vmatprep.subr.bf16.mxu1 %v3754_v26  ;;  %v3827_v25 = vld [vmem:[#allocation4 + $0x700] ss:$16 sps:$4 sm:$0xff]   ;;  %v3830_v26 = vld [vmem:[#allocation4 + $0x388] ss:$16 sps:$4 sm:$0xff]  }
 0x17a   :  { %2196 = vmatpush1.bf16.msra.mxu0 %v3749_v27  ;;  %2290 = vmatpush1.bf16.msra.mxu1 %v3752_v28  ;;  %v3835_v27 = vld [vmem:[#allocation4 + $0x724] ss:$16 sps:$4 sm:$0xff]   ;;  %v3838_v28 = vld [vmem:[#allocation4 + $0x3ac] ss:$16 sps:$4 sm:$0xff]  }
 0x17b   :  { %2197 = vmatprep.subr.bf16.mxu0 %v3757_v29  ;;  %2302 = vmatprep.subr.bf16.mxu1 %v3760_v30  ;;  %v3833_v29 = vld [vmem:[#allocation4 + $0x720] ss:$16 sps:$4 sm:$0xff]   ;;  %v3836_v30 = vld [vmem:[#allocation4 + $0x3a8] ss:$16 sps:$4 sm:$0xff]  }
 0x17d   :  { %2292 = vmatmul.mubr.bf16.vlgmr.msra.gmra.mrb[8].mxu1 %v4324_v16  ;;  %v3773_v16 = vld [vmem:[#allocation4 + $0x5e0] ss:$16 sps:$4 sm:$0xff]  }
 0x17e   :  { %2198 = vmatpush1.bf16.msra.mxu0 %v3755_v31  ;;  %2303 = vmatpush1.bf16.msra.mxu1 %v3758_v32  ;;  %v3841_v31 = vld [vmem:[#allocation4 + $0x744] ss:$16 sps:$4 sm:$0xff]   ;;  %v3844_v32 = vld [vmem:[#allocation4 + $0x3cc] ss:$16 sps:$4 sm:$0xff]  }
 0x17f   :  { %2334 = vmatprep.mubr.bf16.mxu1 %v4343_v13  ;;  %2199 = vmatprep.subr.bf16.mxu0 %v3763_v33  ;;  %v3784_v13 = vld [vmem:[#allocation4 + $0x28c] ss:$16 sps:$4 sm:$0xff]   ;;  %v3839_v33 = vld [vmem:[#allocation4 + $0x740] ss:$16 sps:$4 sm:$0xff]  }
 0x180   :  { %2304 = vmatprep.subr.bf16.mxu1 %v3766_v34  ;;  %v3842_v34 = vld [vmem:[#allocation4 + $0x3c8] ss:$16 sps:$4 sm:$0xff]  }
 0x182   :  { %2200 = vmatpush1.bf16.msra.mxu0 %v3761_v35  ;;  %2305 = vmatpush1.bf16.msra.mxu1 %v3764_v38  ;;  %v3847_v35 = vld [vmem:[#allocation4 + $0x764] ss:$16 sps:$4 sm:$0xff]   ;;  %v3850_v38 = vld [vmem:[#allocation4 + $0x3ec] ss:$16 sps:$4 sm:$0xff]  }
 0x183   :  { %2201 = vmatprep.subr.bf16.mxu0 %v3769_v39  ;;  %2306 = vmatprep.subr.bf16.mxu1 %v3772_v40  ;;  %v3845_v39 = vld [vmem:[#allocation4 + $0x760] ss:$16 sps:$4 sm:$0xff]   ;;  %v3848_v40 = vld [vmem:[#allocation4 + $0x3e8] ss:$16 sps:$4 sm:$0xff]  }
 0x186   :  { %2202 = vmatpush1.bf16.msra.mxu0 %v3767_v41  ;;  %2307 = vmatpush1.bf16.msra.mxu1 %v3770_v42  ;;  %v3853_v41 = vld [vmem:[#allocation4 + $0x784] ss:$16 sps:$4 sm:$0xff]   ;;  %v3856_v42 = vld [vmem:[#allocation4 + $0x40c] ss:$16 sps:$4 sm:$0xff]  }
 0x187   :  { %2203 = vmatprep.subr.bf16.mxu0 %v3775_v43  ;;  %2308 = vmatprep.subr.bf16.mxu1 %v3778_v44  ;;  %v3851_v43 = vld [vmem:[#allocation4 + $0x780] ss:$16 sps:$4 sm:$0xff]   ;;  %v3854_v44 = vld [vmem:[#allocation4 + $0x408] ss:$16 sps:$4 sm:$0xff]  }
 0x18a   :  { %2204 = vmatpush1.bf16.msra.mxu0 %v3773_v16  ;;  %2309 = vmatpush1.bf16.msra.mxu1 %v3776_v45  ;;  %v3859_v16 = vld [vmem:[#allocation4 + $0x7a4] ss:$16 sps:$4 sm:$0xff]   ;;  %v3862_v45 = vld [vmem:[#allocation4 + $0x42c] ss:$16 sps:$4 sm:$0xff]  }
 0x18b   :  { %2216 = vmatprep.subr.bf16.mxu0 %v3781_v18  ;;  %2310 = vmatprep.subr.bf16.mxu1 %v3784_v13  ;;  %v3857_v18 = vld [vmem:[#allocation4 + $0x7a0] ss:$16 sps:$4 sm:$0xff]   ;;  %v3860_v13 = vld [vmem:[#allocation4 + $0x428] ss:$16 sps:$4 sm:$0xff]  }
 0x18d   :  { %2206 = vmatmul.mubr.bf16.vlgmr.msra.gmra.mrb[12].mxu0 %v4353_v52 }
 0x18e   :  { %2217 = vmatpush1.bf16.msra.mxu0 %v3779_v46  ;;  %2311 = vmatpush1.bf16.msra.mxu1 %v3782_v47  ;;  %v3865_v46 = vld [vmem:[#allocation4 + $0x7c4] ss:$16 sps:$4 sm:$0xff]   ;;  %v3868_v47 = vld [vmem:[#allocation4 + $0x44c] ss:$16 sps:$4 sm:$0xff]  }
 0x18f   :  { %2218 = vmatprep.subr.bf16.mxu0 %v3787_v48  ;;  %2312 = vmatprep.subr.bf16.mxu1 %v3790_v49  ;;  %v3863_v48 = vld [vmem:[#allocation4 + $0x7c0] ss:$16 sps:$4 sm:$0xff]   ;;  %v3866_v49 = vld [vmem:[#allocation4 + $0x448] ss:$16 sps:$4 sm:$0xff]  }
 0x190   :  { %2248 = vmatprep.mubr.bf16.mxu0 %v4346_v24 }
 0x192   :  { %2219 = vmatpush1.bf16.msra.mxu0 %v3785_v50  ;;  %2313 = vmatpush1.bf16.msra.mxu1 %v3788_v51  ;;  %v3871_v50 = vld [vmem:[#allocation4 + $0x7e4] ss:$16 sps:$4 sm:$0xff]   ;;  %v3874_v51 = vld [vmem:[#allocation4 + $0x46c] ss:$16 sps:$4 sm:$0xff]  }
 0x193   :  { %2220 = vmatprep.subr.bf16.mxu0 %v3793_v53  ;;  %2314 = vmatprep.subr.bf16.mxu1 %v3796_v54  ;;  %v3872_v53 = vld [vmem:[#allocation4 + $0x468] ss:$16 sps:$4 sm:$0xff]   ;;  %v3877_v54 = vld [vmem:[#allocation4 + $0x48c] ss:$16 sps:$4 sm:$0xff]  }
 0x196   :  { %2221 = vmatpush1.bf16.msra.mxu0 %v3791_v56  ;;  %2315 = vmatpush1.bf16.msra.mxu1 %v3794_v57  ;;  %v3875_v56 = vld [vmem:[#allocation4 + $0x488] ss:$16 sps:$4 sm:$0xff]  }
 0x197   :  { %2222 = vmatprep.subr.bf16.mxu0 %v3799_v58  ;;  %2316 = vmatprep.subr.bf16.mxu1 %v3802_v59  ;;  %v3959_v57 = vld [vmem:[#allocation6] ss:$8 sps:$4 sm:$0xff]   ;;  %v3880_v58 = vld [vmem:[#allocation4 + $0x4ac] ss:$16 sps:$4 sm:$0xff]  }
 0x198   :  { %v3964_v59 = vld [vmem:[#allocation6 + $0x14] ss:$8 sps:$4 sm:$0xff]  }
 0x19a   :  { %2223 = vmatpush1.bf16.msra.mxu0 %v3797_v60  ;;  %2317 = vmatpush1.bf16.msra.mxu1 %v3800_v61  ;;  %v3878_v60 = vld [vmem:[#allocation4 + $0x4a8] ss:$16 sps:$4 sm:$0xff]  }
 0x19b   :  { %2224 = vmatprep.subr.bf16.mxu0 %v3805_v62  ;;  %2318 = vmatprep.subr.bf16.mxu1 %v3808_v63  ;;  %v3962_v61 = vld [vmem:[#allocation6 + $0x10] ss:$8 sps:$4 sm:$0xff]   ;;  %v3883_v62 = vld [vmem:[#allocation4 + $0x4cc] ss:$16 sps:$4 sm:$0xff]  }
 0x19c   :  { %v3967_v63 = vld [vmem:[#allocation6 + $0x24] ss:$8 sps:$4 sm:$0xff]  }
 0x19e   :  { %2225 = vmatpush1.bf16.msra.mxu0 %v3803_v1  ;;  %2319 = vmatpush1.bf16.msra.mxu1 %v3806_v2  ;;  %v3881_v1 = vld [vmem:[#allocation4 + $0x4c8] ss:$16 sps:$4 sm:$0xff]  }
 0x19f   :  { %2226 = vmatprep.subr.bf16.mxu0 %v3811_v3  ;;  %2320 = vmatprep.subr.bf16.mxu1 %v3814_v4  ;;  %v3965_v2 = vld [vmem:[#allocation6 + $0x20] ss:$8 sps:$4 sm:$0xff]   ;;  %v3886_v3 = vld [vmem:[#allocation4 + $0x4ec] ss:$16 sps:$4 sm:$0xff]  }
 0x1a0   :  { %v3970_v4 = vld [vmem:[#allocation6 + $0x34] ss:$8 sps:$4 sm:$0xff]  }
 0x1a2   :  { %2227 = vmatpush1.bf16.msra.mxu0 %v3809_v5  ;;  %2321 = vmatpush1.bf16.msra.mxu1 %v3812_v6  ;;  %v3884_v5 = vld [vmem:[#allocation4 + $0x4e8] ss:$16 sps:$4 sm:$0xff]  }
 0x1a3   :  { %2228 = vmatprep.subr.bf16.mxu0 %v3817_v7  ;;  %2322 = vmatprep.subr.bf16.mxu1 %v3820_v8  ;;  %v3968_v6 = vld [vmem:[#allocation6 + $0x30] ss:$8 sps:$4 sm:$0xff]   ;;  %v3889_v7 = vld [vmem:[#allocation4 + $0x50c] ss:$16 sps:$4 sm:$0xff]  }
 0x1a4   :  { %v3973_v8 = vld [vmem:[#allocation6 + $0x44] ss:$8 sps:$4 sm:$0xff]  }
 0x1a6   :  { %2229 = vmatpush1.bf16.msra.mxu0 %v3815_v9  ;;  %2323 = vmatpush1.bf16.msra.mxu1 %v3818_v12  ;;  %v3887_v9 = vld [vmem:[#allocation4 + $0x508] ss:$16 sps:$4 sm:$0xff]  }
 0x1a7   :  { %2230 = vmatprep.subr.bf16.mxu0 %v3823_v14  ;;  %2324 = vmatprep.subr.bf16.mxu1 %v3826_v20  ;;  %v3971_v12 = vld [vmem:[#allocation6 + $0x40] ss:$8 sps:$4 sm:$0xff]   ;;  %v3892_v14 = vld [vmem:[#allocation4 + $0x52c] ss:$16 sps:$4 sm:$0xff]  }
 0x1a8   :  { %v3976_v20 = vld [vmem:[#allocation6 + $0x54] ss:$8 sps:$4 sm:$0xff]  }
 0x1aa   :  { %2231 = vmatpush1.bf16.msra.mxu0 %v3821_v21  ;;  %2325 = vmatpush1.bf16.msra.mxu1 %v3824_v22  ;;  %v3890_v21 = vld [vmem:[#allocation4 + $0x528] ss:$16 sps:$4 sm:$0xff]  }
 0x1ab   :  { %2232 = vmatprep.subr.bf16.mxu0 %v3829_v23  ;;  %2326 = vmatprep.subr.bf16.mxu1 %v3832_v0  ;;  %v3974_v22 = vld [vmem:[#allocation6 + $0x50] ss:$8 sps:$4 sm:$0xff]   ;;  %v3895_v23 = vld [vmem:[#allocation4 + $0x54c] ss:$16 sps:$4 sm:$0xff]  }
 0x1ac   :  { %v3979_v0 = vld [vmem:[#allocation6 + $0x64] ss:$8 sps:$4 sm:$0xff]  }
 0x1ae   :  { %2233 = vmatpush1.bf16.msra.mxu0 %v3827_v25  ;;  %2327 = vmatpush1.bf16.msra.mxu1 %v3830_v26  ;;  %v3893_v25 = vld [vmem:[#allocation4 + $0x548] ss:$16 sps:$4 sm:$0xff]  }
 0x1af   :  { %2234 = vmatprep.subr.bf16.mxu0 %v3835_v27  ;;  %2328 = vmatprep.subr.bf16.mxu1 %v3838_v28  ;;  %v3977_v26 = vld [vmem:[#allocation6 + $0x60] ss:$8 sps:$4 sm:$0xff]   ;;  %v3898_v27 = vld [vmem:[#allocation4 + $0x56c] ss:$16 sps:$4 sm:$0xff]  }
 0x1b0   :  { %v3982_v28 = vld [vmem:[#allocation6 + $0x74] ss:$8 sps:$4 sm:$0xff]  }
 0x1b2   :  { %2235 = vmatpush1.bf16.msra.mxu0 %v3833_v29  ;;  %2329 = vmatpush1.bf16.msra.mxu1 %v3836_v30  ;;  %v3896_v29 = vld [vmem:[#allocation4 + $0x568] ss:$16 sps:$4 sm:$0xff]  }
 0x1b3   :  { %2236 = vmatprep.subr.bf16.mxu0 %v3841_v31  ;;  %2330 = vmatprep.subr.bf16.mxu1 %v3844_v32  ;;  %v3980_v30 = vld [vmem:[#allocation6 + $0x70] ss:$8 sps:$4 sm:$0xff]   ;;  %v3901_v31 = vld [vmem:[#allocation4 + $0x58c] ss:$16 sps:$4 sm:$0xff]  }
 0x1b4   :  { %v3985_v32 = vld [vmem:[#allocation6 + $0x84] ss:$8 sps:$4 sm:$0xff]  }
 0x1b6   :  { %2237 = vmatpush1.bf16.msra.mxu0 %v3839_v33  ;;  %2331 = vmatpush1.bf16.msra.mxu1 %v3842_v34  ;;  %v3899_v33 = vld [vmem:[#allocation4 + $0x588] ss:$16 sps:$4 sm:$0xff]  }
 0x1b7   :  { %2238 = vmatprep.subr.bf16.mxu0 %v3847_v35  ;;  %2332 = vmatprep.subr.bf16.mxu1 %v3850_v38  ;;  %v3983_v34 = vld [vmem:[#allocation6 + $0x80] ss:$8 sps:$4 sm:$0xff]   ;;  %v3904_v35 = vld [vmem:[#allocation4 + $0x5ac] ss:$16 sps:$4 sm:$0xff]  }
 0x1b8   :  { %v3988_v38 = vld [vmem:[#allocation6 + $0x94] ss:$8 sps:$4 sm:$0xff]  }
 0x1ba   :  { %2239 = vmatpush1.bf16.msra.mxu0 %v3845_v39  ;;  %2333 = vmatpush1.bf16.msra.mxu1 %v3848_v40  ;;  %v3902_v39 = vld [vmem:[#allocation4 + $0x5a8] ss:$16 sps:$4 sm:$0xff]  }
 0x1bb   :  { %2240 = vmatprep.subr.bf16.mxu0 %v3853_v41  ;;  %2345 = vmatprep.subr.bf16.mxu1 %v3856_v42  ;;  %v3986_v40 = vld [vmem:[#allocation6 + $0x90] ss:$8 sps:$4 sm:$0xff]   ;;  %v3907_v41 = vld [vmem:[#allocation4 + $0x5cc] ss:$16 sps:$4 sm:$0xff]  }
 0x1bc   :  { %v3991_v42 = vld [vmem:[#allocation6 + $0xa4] ss:$8 sps:$4 sm:$0xff]  }
 0x1bd   :  { %2335 = vmatmul.mubr.bf16.vlgmr.msra.gmra.mrb[8].mxu1 %v4339_v10  ;;  %v3869_v10 = vld [vmem:[#allocation4 + $0x7e0] ss:$16 sps:$4 sm:$0xff]  }
 0x1be   :  { %2241 = vmatpush1.bf16.msra.mxu0 %v3851_v43  ;;  %2346 = vmatpush1.bf16.msra.mxu1 %v3854_v44  ;;  %v3905_v43 = vld [vmem:[#allocation4 + $0x5c8] ss:$16 sps:$4 sm:$0xff]  }
 0x1bf   :  { %2377 = vmatprep.mubr.bf16.mxu1 %v4355_v55  ;;  %2242 = vmatprep.subr.bf16.mxu0 %v3859_v16  ;;  %v3961_v55 = vld [vmem:[#allocation6 + $0x4] ss:$8 sps:$4 sm:$0xff]   ;;  %v3989_v44 = vld [vmem:[#allocation6 + $0xa0] ss:$8 sps:$4 sm:$0xff]  }
 0x1c0   :  { %2347 = vmatprep.subr.bf16.mxu1 %v3862_v45  ;;  %v3910_v16 = vld [vmem:[#allocation4 + $0x5ec] ss:$16 sps:$4 sm:$0xff]  }
 0x1c1   :  { %v3994_v45 = vld [vmem:[#allocation6 + $0xb4] ss:$8 sps:$4 sm:$0xff]  }
 0x1c2   :  { %2243 = vmatpush1.bf16.msra.mxu0 %v3857_v18  ;;  %2348 = vmatpush1.bf16.msra.mxu1 %v3860_v13  ;;  %v3908_v18 = vld [vmem:[#allocation4 + $0x5e8] ss:$16 sps:$4 sm:$0xff]  }
 0x1c3   :  { %2244 = vmatprep.subr.bf16.mxu0 %v3865_v46  ;;  %2349 = vmatprep.subr.bf16.mxu1 %v3868_v47  ;;  %v3992_v13 = vld [vmem:[#allocation6 + $0xb0] ss:$8 sps:$4 sm:$0xff]   ;;  %v3913_v46 = vld [vmem:[#allocation4 + $0x60c] ss:$16 sps:$4 sm:$0xff]  }
 0x1c4   :  { %v3997_v47 = vld [vmem:[#allocation6 + $0xc4] ss:$8 sps:$4 sm:$0xff]  }
 0x1c6   :  { %2245 = vmatpush1.bf16.msra.mxu0 %v3863_v48  ;;  %2350 = vmatpush1.bf16.msra.mxu1 %v3866_v49  ;;  %v3911_v48 = vld [vmem:[#allocation4 + $0x608] ss:$16 sps:$4 sm:$0xff]   ;;  %v3916_v49 = vld [vmem:[#allocation4 + $0x62c] ss:$16 sps:$4 sm:$0xff]  }
 0x1c7   :  { %2246 = vmatprep.subr.bf16.mxu0 %v3871_v50  ;;  %2351 = vmatprep.subr.bf16.mxu1 %v3874_v51  ;;  %v3995_v50 = vld [vmem:[#allocation6 + $0xc0] ss:$8 sps:$4 sm:$0xff]   ;;  %v4000_v51 = vld [vmem:[#allocation6 + $0xd4] ss:$8 sps:$4 sm:$0xff]  }
 0x1ca   :  { %2247 = vmatpush1.bf16.msra.mxu0 %v3869_v10  ;;  %2352 = vmatpush1.bf16.msra.mxu1 %v3872_v53  ;;  %v3914_v10 = vld [vmem:[#allocation4 + $0x628] ss:$16 sps:$4 sm:$0xff]   ;;  %v3919_v53 = vld [vmem:[#allocation4 + $0x64c] ss:$16 sps:$4 sm:$0xff]  }
 0x1cb   :  { %2353 = vmatprep.subr.bf16.mxu1 %v3877_v54  ;;  %2839 = vmatprep.subr.bf16.mxu0 %v3961_v55  ;;  %v3998_v54 = vld [vmem:[#allocation6 + $0xd0] ss:$8 sps:$4 sm:$0xff]  }
 0x1cc   :  { %v3917_v55 = vld [vmem:[#allocation4 + $0x648] ss:$16 sps:$4 sm:$0xff]  }
 0x1cd   :  { %2249 = vmatmul.mubr.bf16.vlgmr.msra.gmra.mrb[12].mxu0 %v4341_v11 }
 0x1ce   :  { %2354 = vmatpush1.bf16.msra.mxu1 %v3875_v56  ;;  %2840 = vmatpush1.bf16.msra.mxu0 %v3959_v57  ;;  %v3922_v56 = vld [vmem:[#allocation4 + $0x66c] ss:$16 sps:$4 sm:$0xff]   ;;  %v3920_v57 = vld [vmem:[#allocation4 + $0x668] ss:$16 sps:$4 sm:$0xff]  }
 0x1cf   :  { %2355 = vmatprep.subr.bf16.mxu1 %v3880_v58  ;;  %2841 = vmatprep.subr.bf16.mxu0 %v3964_v59  ;;  %v3925_v58 = vld [vmem:[#allocation4 + $0x68c] ss:$16 sps:$4 sm:$0xff]  }
 0x1d0   :  { %v3928_v59 = vld [vmem:[#allocation4 + $0x6ac] ss:$16 sps:$4 sm:$0xff]  }
 0x1d2   :  { %2356 = vmatpush1.bf16.msra.mxu1 %v3878_v60  ;;  %2842 = vmatpush1.bf16.msra.mxu0 %v3962_v61  ;;  %v3931_v60 = vld [vmem:[#allocation4 + $0x6cc] ss:$16 sps:$4 sm:$0xff]  }
 0x1d3   :  { %2357 = vmatprep.subr.bf16.mxu1 %v3883_v62  ;;  %2843 = vmatprep.subr.bf16.mxu0 %v3967_v63 }
 0x1d6   :  { %2358 = vmatpush1.bf16.msra.mxu1 %v3881_v1  ;;  %2844 = vmatpush1.bf16.msra.mxu0 %v3965_v2  ;;  %v3929_v1 = vld [vmem:[#allocation4 + $0x6c8] ss:$16 sps:$4 sm:$0xff]  }
 0x1d7   :  { %2359 = vmatprep.subr.bf16.mxu1 %v3886_v3  ;;  %2845 = vmatprep.subr.bf16.mxu0 %v3970_v4  ;;  %v3934_v3 = vld [vmem:[#allocation4 + $0x6ec] ss:$16 sps:$4 sm:$0xff]   ;;  %v3932_v4 = vld [vmem:[#allocation4 + $0x6e8] ss:$16 sps:$4 sm:$0xff]  }
 0x1da   :  { %2360 = vmatpush1.bf16.msra.mxu1 %v3884_v5  ;;  %2846 = vmatpush1.bf16.msra.mxu0 %v3968_v6  ;;  %v3937_v5 = vld [vmem:[#allocation4 + $0x70c] ss:$16 sps:$4 sm:$0xff]   ;;  %v3935_v6 = vld [vmem:[#allocation4 + $0x708] ss:$16 sps:$4 sm:$0xff]  }
 0x1db   :  { %2361 = vmatprep.subr.bf16.mxu1 %v3889_v7  ;;  %2847 = vmatprep.subr.bf16.mxu0 %v3973_v8  ;;  %v3940_v7 = vld [vmem:[#allocation4 + $0x72c] ss:$16 sps:$4 sm:$0xff]   ;;  %v3938_v8 = vld [vmem:[#allocation4 + $0x728] ss:$16 sps:$4 sm:$0xff]  }
 0x1de   :  { %2362 = vmatpush1.bf16.msra.mxu1 %v3887_v9  ;;  %2848 = vmatpush1.bf16.msra.mxu0 %v3971_v12  ;;  %v3943_v9 = vld [vmem:[#allocation4 + $0x74c] ss:$16 sps:$4 sm:$0xff]   ;;  %v3941_v12 = vld [vmem:[#allocation4 + $0x748] ss:$16 sps:$4 sm:$0xff]  }
 0x1df   :  { %2363 = vmatprep.subr.bf16.mxu1 %v3892_v14  ;;  %2849 = vmatprep.subr.bf16.mxu0 %v3976_v20  ;;  %v4003_v14 = vld [vmem:[#allocation6 + $0xe4] ss:$8 sps:$4 sm:$0xff]  }
 0x1e0   :  { %v3946_v20 = vld [vmem:[#allocation4 + $0x76c] ss:$16 sps:$4 sm:$0xff]  }
 0x1e2   :  { %2364 = vmatpush1.bf16.msra.mxu1 %v3890_v21  ;;  %2850 = vmatpush1.bf16.msra.mxu0 %v3974_v22  ;;  %v4001_v21 = vld [vmem:[#allocation6 + $0xe0] ss:$8 sps:$4 sm:$0xff]  }
 0x1e3   :  { %2365 = vmatprep.subr.bf16.mxu1 %v3895_v23  ;;  %2851 = vmatprep.subr.bf16.mxu0 %v3979_v0  ;;  %v3944_v22 = vld [vmem:[#allocation4 + $0x768] ss:$16 sps:$4 sm:$0xff]   ;;  %v4006_v23 = vld [vmem:[#allocation6 + $0xf4] ss:$8 sps:$4 sm:$0xff]  }
 0x1e4   :  { %v3949_v0 = vld [vmem:[#allocation4 + $0x78c] ss:$16 sps:$4 sm:$0xff]  }
 0x1e6   :  { %2366 = vmatpush1.bf16.msra.mxu1 %v3893_v25  ;;  %2852 = vmatpush1.bf16.msra.mxu0 %v3977_v26  ;;  %v4004_v25 = vld [vmem:[#allocation6 + $0xf0] ss:$8 sps:$4 sm:$0xff]  }
 0x1e7   :  { %2367 = vmatprep.subr.bf16.mxu1 %v3898_v27  ;;  %2853 = vmatprep.subr.bf16.mxu0 %v3982_v28  ;;  %v3947_v26 = vld [vmem:[#allocation4 + $0x788] ss:$16 sps:$4 sm:$0xff]   ;;  %v3952_v27 = vld [vmem:[#allocation4 + $0x7ac] ss:$16 sps:$4 sm:$0xff]  }
 0x1e8   :  { %v4009_v28 = vld [vmem:[#allocation6 + $0x104] ss:$8 sps:$4 sm:$0xff]  }
 0x1ea   :  { %2368 = vmatpush1.bf16.msra.mxu1 %v3896_v29  ;;  %2854 = vmatpush1.bf16.msra.mxu0 %v3980_v30  ;;  %v3950_v29 = vld [vmem:[#allocation4 + $0x7a8] ss:$16 sps:$4 sm:$0xff]   ;;  %v3955_v30 = vld [vmem:[#allocation4 + $0x7cc] ss:$16 sps:$4 sm:$0xff]  }
 0x1eb   :  { %2369 = vmatprep.subr.bf16.mxu1 %v3901_v31  ;;  %2855 = vmatprep.subr.bf16.mxu0 %v3985_v32  ;;  %v3953_v31 = vld [vmem:[#allocation4 + $0x7c8] ss:$16 sps:$4 sm:$0xff]   ;;  %v3958_v32 = vld [vmem:[#allocation4 + $0x7ec] ss:$16 sps:$4 sm:$0xff]  }
 0x1ee   :  { %2370 = vmatpush1.bf16.msra.mxu1 %v3899_v33  ;;  %2856 = vmatpush1.bf16.msra.mxu0 %v3983_v34  ;;  %v3956_v33 = vld [vmem:[#allocation4 + $0x7e8] ss:$16 sps:$4 sm:$0xff]   ;;  %v4379_v34 = vld [vmem:[%s4413_s4] sm:$0xf] }
 0x1ef   :  { %2371 = vmatprep.subr.bf16.mxu1 %v3904_v35  ;;  %2857 = vmatprep.subr.bf16.mxu0 %v3988_v38  ;;  %v790_v35 = vrot.slane %v4379_v34, %v4310_v17  ;;  %v4055_v38 = vld [vmem:[#allocation7 + $0x40] sm:$0xff]  }
 0x1f2   :  { %2372 = vmatpush1.bf16.msra.mxu1 %v3902_v39  ;;  %2858 = vmatpush1.bf16.msra.mxu0 %v3986_v40  ;;  %v4056_v39 = vld [vmem:[#allocation7] sm:$0xff]   ;;  %v4057_v40 = vld [vmem:[#allocation7 + $0x48] sm:$0xff]  }
 0x1f3   :  { %2373 = vmatprep.subr.bf16.mxu1 %v3907_v41  ;;  %2859 = vmatprep.subr.bf16.mxu0 %v3991_v42  ;;  %v794_v41 = vrot.slane %v4379_v34, %v4318_v19  ;;  %v4058_v42 = vld [vmem:[#allocation7 + $0x8] sm:$0xff]  }
 0x1f6   :  { %2374 = vmatpush1.bf16.msra.mxu1 %v3905_v43  ;;  %2860 = vmatpush1.bf16.msra.mxu0 %v3989_v44 }
 0x1f7   :  { %2375 = vmatprep.subr.bf16.mxu1 %v3910_v16  ;;  %2861 = vmatprep.subr.bf16.mxu0 %v3994_v45 }
 0x1fa   :  { %2376 = vmatpush1.bf16.msra.mxu1 %v3908_v18  ;;  %2862 = vmatpush1.bf16.msra.mxu0 %v3992_v13 }
 0x1fb   :  { %2388 = vmatprep.subr.bf16.mxu1 %v3913_v46  ;;  %2863 = vmatprep.subr.bf16.mxu0 %v3997_v47 }
 0x1fd   :  { %2378 = vmatmul.mubr.bf16.vlgmr.msra.gmra.mrb[8].mxu1 %v4353_v52  ;;  %v3923_v52 = vld [vmem:[#allocation4 + $0x688] ss:$16 sps:$4 sm:$0xff]  }
 0x1fe   :  { %2389 = vmatpush1.bf16.msra.mxu1 %v3911_v48  ;;  %2420 = vmatprep.mubr.bf16.mxu1 %v4346_v24  ;;  %v3926_v24 = vld [vmem:[#allocation4 + $0x6a8] ss:$16 sps:$4 sm:$0xff]  }
 0x1ff   :  { %2390 = vmatprep.subr.bf16.mxu1 %v3916_v49  ;;  %2864 = vmatpush1.bf16.msra.mxu0 %v3995_v50  ;;  %v4060_v49 = vld [vmem:[#allocation7 + $0x10] sm:$0xff]  }
 0x200   :  { %2865 = vmatprep.subr.bf16.mxu0 %v4000_v51 }
 0x202   :  { %2391 = vmatpush1.bf16.msra.mxu1 %v3914_v10  ;;  %v4061_v10 = vld [vmem:[#allocation7 + $0x58] sm:$0xff]  }
 0x203   :  { %2392 = vmatprep.subr.bf16.mxu1 %v3919_v53  ;;  %2866 = vmatpush1.bf16.msra.mxu0 %v3998_v54 }
 0x204   :  { %2867 = vmatprep.subr.bf16.mxu0 %v4003_v14  ;;  %v4025_v14 = vld [vmem:[#allocation6 + $0x160] ss:$8 sps:$4 sm:$0xff]  }
 0x206   :  { %2393 = vmatpush1.bf16.msra.mxu1 %v3917_v55 }
 0x207   :  { %2394 = vmatprep.subr.bf16.mxu1 %v3922_v56  ;;  %2868 = vmatpush1.bf16.msra.mxu0 %v4001_v21  ;;  %v4028_v21 = vld [vmem:[#allocation6 + $0x170] ss:$8 sps:$4 sm:$0xff]  }
 0x208   :  { %2869 = vmatprep.subr.bf16.mxu0 %v4006_v23  ;;  %v4031_v23 = vld [vmem:[#allocation6 + $0x180] ss:$8 sps:$4 sm:$0xff]  }
 0x20a   :  { %2395 = vmatpush1.bf16.msra.mxu1 %v3920_v57 }
 0x20b   :  { %2396 = vmatprep.subr.bf16.mxu1 %v3925_v58  ;;  %2870 = vmatpush1.bf16.msra.mxu0 %v4004_v25  ;;  %v4062_v58 = vld [vmem:[#allocation7 + $0x18] sm:$0xff]  }
 0x20c   :  { %2882 = vmatprep.subr.bf16.mxu0 %v4009_v28  ;;  %v4034_v25 = vld [vmem:[#allocation6 + $0x190] ss:$8 sps:$4 sm:$0xff]   ;;  %v4042_v28 = vld [vmem:[#allocation6 + $0x1b4] ss:$8 sps:$4 sm:$0xff]  }
 0x20e   :  { %2397 = vmatpush1.bf16.msra.mxu1 %v3923_v52 }
 0x20f   :  { %2398 = vmatprep.subr.bf16.mxu1 %v3928_v59  ;;  %v4063_v59 = vld [vmem:[#allocation7 + $0x60] sm:$0xff]  }
 0x210   :  { %v4367_v61 = vpop.f32.mrb[4].mxu1 }
 0x211   :  { %v4369_v62 = vpop.f32.mrb[5].mxu1  ;;  %v2122_v43 = vadd.f32 %v4367_v61, %v790_v35  ;;  %v4012_v61 = vld [vmem:[#allocation6 + $0x114] ss:$8 sps:$4 sm:$0xff]  }
 0x212   :  { %2399 = vmatpush1.bf16.msra.mxu1 %v3926_v24  ;;  %v4371_v63 = vpop.f32.mrb[6].mxu1  ;;  %v2124_v44 = vadd.f32 %v4369_v62, %v794_v41  ;;  %v4064_v62 = vld [vmem:[#allocation7 + $0x20] sm:$0xff]  }
 0x213   :  { %v4373_v2 = vpop.f32.mrb[7].mxu1  ;;  %2400 = vmatprep.subr.bf16.mxu1 %v3931_v60  ;;  %v2126_v45 = vadd.f32 %v4371_v63, %v790_v35  ;;  %v4007_v60 = vld [vmem:[#allocation6 + $0x100] ss:$8 sps:$4 sm:$0xff]   ;;  %v4051_v35 = vld [vmem:[#allocation6 + $0x1e4] ss:$8 sps:$4 sm:$0xff]  }
 0x214   :  { %v2128_v46 = vadd.f32 %v4373_v2, %v794_v41  ;;  %v4065_v63 = vld [vmem:[#allocation7 + $0x68] sm:$0xff]   ;;  %v798_v41 = vrot.slane %v4379_v34, %v131_v36 }
 0x215   :  { %v4015_v2 = vld [vmem:[#allocation6 + $0x124] ss:$8 sps:$4 sm:$0xff]  }
 0x216   :  { %2401 = vmatpush1.bf16.msra.mxu1 %v3929_v1  ;;  %v4010_v1 = vld [vmem:[#allocation6 + $0x110] ss:$8 sps:$4 sm:$0xff]   ;;  %v4066_v36 = vld [vmem:[#allocation7 + $0x28] sm:$0xff]  }
 0x217   :  { %2402 = vmatprep.subr.bf16.mxu1 %v3934_v3  ;;  %v4013_v3 = vld [vmem:[#allocation6 + $0x120] ss:$8 sps:$4 sm:$0xff]  }
 0x21a   :  { %2403 = vmatpush1.bf16.msra.mxu1 %v3932_v4  ;;  %v4018_v4 = vld [vmem:[#allocation6 + $0x134] ss:$8 sps:$4 sm:$0xff]  }
 0x21b   :  { %2404 = vmatprep.subr.bf16.mxu1 %v3937_v5  ;;  %v4016_v5 = vld [vmem:[#allocation6 + $0x130] ss:$8 sps:$4 sm:$0xff]  }
 0x21e   :  { %2405 = vmatpush1.bf16.msra.mxu1 %v3935_v6  ;;  %v4021_v6 = vld [vmem:[#allocation6 + $0x144] ss:$8 sps:$4 sm:$0xff]  }
 0x21f   :  { %2406 = vmatprep.subr.bf16.mxu1 %v3940_v7  ;;  %v4019_v7 = vld [vmem:[#allocation6 + $0x140] ss:$8 sps:$4 sm:$0xff]  }
 0x222   :  { %2407 = vmatpush1.bf16.msra.mxu1 %v3938_v8  ;;  %v4024_v8 = vld [vmem:[#allocation6 + $0x154] ss:$8 sps:$4 sm:$0xff]  }
 0x223   :  { %2408 = vmatprep.subr.bf16.mxu1 %v3943_v9  ;;  %v4022_v9 = vld [vmem:[#allocation6 + $0x150] ss:$8 sps:$4 sm:$0xff]  }
 0x226   :  { %2409 = vmatpush1.bf16.msra.mxu1 %v3941_v12  ;;  %v4027_v12 = vld [vmem:[#allocation6 + $0x164] ss:$8 sps:$4 sm:$0xff]  }
 0x227   :  { %2410 = vmatprep.subr.bf16.mxu1 %v3946_v20  ;;  %v4030_v20 = vld [vmem:[#allocation6 + $0x174] ss:$8 sps:$4 sm:$0xff]  }
 0x22a   :  { %2411 = vmatpush1.bf16.msra.mxu1 %v3944_v22  ;;  %v4033_v22 = vld [vmem:[#allocation6 + $0x184] ss:$8 sps:$4 sm:$0xff]  }
 0x22b   :  { %2412 = vmatprep.subr.bf16.mxu1 %v3949_v0  ;;  %v4036_v0 = vld [vmem:[#allocation6 + $0x194] ss:$8 sps:$4 sm:$0xff]  }
 0x22e   :  { %2413 = vmatpush1.bf16.msra.mxu1 %v3947_v26  ;;  %v4039_v26 = vld [vmem:[#allocation6 + $0x1a4] ss:$8 sps:$4 sm:$0xff]  }
 0x22f   :  { %2414 = vmatprep.subr.bf16.mxu1 %v3952_v27  ;;  %v4037_v27 = vld [vmem:[#allocation6 + $0x1a0] ss:$8 sps:$4 sm:$0xff]  }
 0x232   :  { %2415 = vmatpush1.bf16.msra.mxu1 %v3950_v29  ;;  %v4040_v29 = vld [vmem:[#allocation6 + $0x1b0] ss:$8 sps:$4 sm:$0xff]  }
 0x233   :  { %2416 = vmatprep.subr.bf16.mxu1 %v3955_v30  ;;  %v4045_v30 = vld [vmem:[#allocation6 + $0x1c4] ss:$8 sps:$4 sm:$0xff]  }
 0x236   :  { %2417 = vmatpush1.bf16.msra.mxu1 %v3953_v31  ;;  %v4043_v31 = vld [vmem:[#allocation6 + $0x1c0] ss:$8 sps:$4 sm:$0xff]  }
 0x237   :  { %2418 = vmatprep.subr.bf16.mxu1 %v3958_v32  ;;  %v4048_v32 = vld [vmem:[#allocation6 + $0x1d4] ss:$8 sps:$4 sm:$0xff]  }
 0x23a   :  { %2419 = vmatpush1.bf16.msra.mxu1 %v3956_v33  ;;  %v4046_v33 = vld [vmem:[#allocation6 + $0x1d0] ss:$8 sps:$4 sm:$0xff]  }
 0x23b   :  { %3491 = vmatprep.subr.bf16.mxu1 %v4055_v38  ;;  %v4049_v38 = vld [vmem:[#allocation6 + $0x1e0] ss:$8 sps:$4 sm:$0xff]  }
 0x23d   :  { %2421 = vmatmul.mubr.bf16.vlgmr.msra.gmra.mrb[8].mxu1 %v4341_v11  ;;  %v4059_v11 = vld [vmem:[#allocation7 + $0x50] sm:$0xff]  }
 0x23e   :  { %3492 = vmatpush3.bf16.msra.mxu1 %v4056_v39  ;;  %v4054_v39 = vld [vmem:[#allocation6 + $0x1f4] ss:$8 sps:$4 sm:$0xff]  }
 0x23f   :  { %3493 = vmatprep.subr.bf16.mxu1 %v4057_v40  ;;  %v4052_v40 = vld [vmem:[#allocation6 + $0x1f0] ss:$8 sps:$4 sm:$0xff]  }
 0x242   :  { %3494 = vmatpush3.bf16.msra.mxu1 %v4058_v42  ;;  %v802_v42 = vrot.slane %v4379_v34, %v135_v37  ;;  %v4068_v37 = vld [vmem:[#allocation7 + $0x30] sm:$0xff]   ;;  %v4069_v34 = vld [vmem:[#allocation7 + $0x78] sm:$0xff]  }
 0x243   :  { %3495 = vmatprep.subr.bf16.mxu1 %v4059_v11 }
 0x246   :  { %3496 = vmatpush3.bf16.msra.mxu1 %v4060_v49 }
 0x247   :  { %3497 = vmatprep.subr.bf16.mxu1 %v4061_v10 }
 0x24a   :  { %3498 = vmatpush3.bf16.msra.mxu1 %v4062_v58 }
 0x24b   :  { %3499 = vmatprep.subr.bf16.mxu1 %v4063_v59 }
 0x24e   :  { %3500 = vmatpush3.bf16.msra.mxu1 %v4064_v62 }
 0x24f   :  { %3501 = vmatprep.subr.bf16.mxu1 %v4065_v63 }
 0x252   :  { %3502 = vmatpush3.bf16.msra.mxu1 %v4066_v36 }
 0x253   :  { %3503 = vmatprep.subr.bf16.mxu1 %v4067_v15 }
 0x256   :  { %3504 = vmatpush3.bf16.msra.mxu1 %v4068_v37 }
 0x257   :  { %3505 = vmatprep.subr.bf16.mxu1 %v4069_v34 }
 0x2a0   :  { %v2250_v16 = vpop.f32.mrb[12].mxu0 }
 0x2a1   :  { %v3514_v18 = vadd.f32 %v2250_v16, %v2122_v43  ;;  %v2252_v13 = vpop.f32.mrb[13].mxu0 }
 0x2a2   :  { %v3516_v47 = vadd.f32 %v2252_v13, %v2124_v44  ;;  %v2254_v48 = vpop.f32.mrb[14].mxu0 }
 0x2a3   :  { %v3518_v50 = vadd.f32 %v2254_v48, %v2126_v45  ;;  %v2256_v51 = vpop.f32.mrb[15].mxu0  ;;  %v2431_v54 = vmax.f32 %v3514_v18, 0.0 }
 0x2a4   :  { %v3520_v53 = vadd.f32 %v2256_v51, %v2128_v46  ;;  %v2432_v56 = vmax.f32 %v3516_v47, 0.0 }
 0x2a5   :  { %v2435_v55 = vmax.f32 %v3518_v50, 0.0 }
 0x2a6   :  { %v2436_v57 = vmax.f32 %v3520_v53, 0.0  ;;  %v4070_v53 = vld [vmem:[#allocation7 + $0x38] sm:$0xff]  }
 0x2a7   :  { %v2439_v52 = vpack.c.bf16 %v2435_v55, %v2431_v54  ;;  %3506 = vmatpush3.bf16.msra.mxu1 %v4070_v53  ;;  %v2507_v54 = vld [vmem:[%s4415_s6] sm:$0x3] }
 0x2a8   :  { %v2440_v24 = vpack.c.bf16 %v2436_v57, %v2432_v56  ;;  %v2512_v55 = vrot.slane %v2507_v54, %v4310_v17  ;;  %v2516_v56 = vrot.slane %v2507_v54, %v4318_v19  ;;  %v3474_v17 = vld [vmem:[%s4417_s8] ss:$0 sm:$0xff] }
 0x2aa   :  { %2871 = vmatprep.mubr.bf16.mxu0 %v2440_v24 }
 0x2ab   :  { %2872 = vmatmul.mubr.bf16.vlgmr.msra.gmra.mrb[16].mxu0 %v2439_v52 }
 0x2ac   :  { %2883 = vmatpush1.bf16.msra.mxu0 %v4007_v60 }
 0x2ad   :  { %2884 = vmatprep.subr.bf16.mxu0 %v4012_v61 }
 0x2b0   :  { %2885 = vmatpush1.bf16.msra.mxu0 %v4010_v1 }
 0x2b1   :  { %2886 = vmatprep.subr.bf16.mxu0 %v4015_v2 }
 0x2b4   :  { %2887 = vmatpush1.bf16.msra.mxu0 %v4013_v3 }
 0x2b5   :  { %2888 = vmatprep.subr.bf16.mxu0 %v4018_v4 }
 0x2b8   :  { %2889 = vmatpush1.bf16.msra.mxu0 %v4016_v5 }
 0x2b9   :  { %2890 = vmatprep.subr.bf16.mxu0 %v4021_v6 }
 0x2bc   :  { %2891 = vmatpush1.bf16.msra.mxu0 %v4019_v7 }
 0x2bd   :  { %2892 = vmatprep.subr.bf16.mxu0 %v4024_v8 }
 0x2c0   :  { %2893 = vmatpush1.bf16.msra.mxu0 %v4022_v9 }
 0x2c1   :  { %2894 = vmatprep.subr.bf16.mxu0 %v4027_v12 }
 0x2c4   :  { %2895 = vmatpush1.bf16.msra.mxu0 %v4025_v14 }
 0x2c5   :  { %2896 = vmatprep.subr.bf16.mxu0 %v4030_v20 }
 0x2c8   :  { %2897 = vmatpush1.bf16.msra.mxu0 %v4028_v21 }
 0x2c9   :  { %2898 = vmatprep.subr.bf16.mxu0 %v4033_v22 }
 0x2cc   :  { %2899 = vmatpush1.bf16.msra.mxu0 %v4031_v23 }
 0x2cd   :  { %2900 = vmatprep.subr.bf16.mxu0 %v4036_v0 }
 0x2d0   :  { %2901 = vmatpush1.bf16.msra.mxu0 %v4034_v25 }
 0x2d1   :  { %2902 = vmatprep.subr.bf16.mxu0 %v4039_v26 }
 0x2d4   :  { %2903 = vmatpush1.bf16.msra.mxu0 %v4037_v27 }
 0x2d5   :  { %2904 = vmatprep.subr.bf16.mxu0 %v4042_v28 }
 0x2d8   :  { %2905 = vmatpush1.bf16.msra.mxu0 %v4040_v29 }
 0x2d9   :  { %2906 = vmatprep.subr.bf16.mxu0 %v4045_v30 }
 0x2dc   :  { %2907 = vmatpush1.bf16.msra.mxu0 %v4043_v31 }
 0x2dd   :  { %2908 = vmatprep.subr.bf16.mxu0 %v4048_v32 }
 0x2e0   :  { %2909 = vmatpush1.bf16.msra.mxu0 %v4046_v33 }
 0x2e1   :  { %2910 = vmatprep.subr.bf16.mxu0 %v4051_v35 }
 0x2e4   :  { %2911 = vmatpush1.bf16.msra.mxu0 %v4049_v38 }
 0x2e5   :  { %2912 = vmatprep.subr.bf16.mxu0 %v4054_v39 }
 0x2e8   :  { %2913 = vmatpush1.bf16.msra.mxu0 %v4052_v40 }
 0x310   :  { %v2422_v43 = vpop.f32.mrb[8].mxu1 }
 0x311   :  { %v3521_v11 = vadd.f32 %v2422_v43, %v798_v41  ;;  %v2424_v44 = vpop.f32.mrb[9].mxu1 }
 0x312   :  { %v3522_v16 = vadd.f32 %v2424_v44, %v802_v42  ;;  %v2426_v45 = vpop.f32.mrb[10].mxu1 }
 0x313   :  { %v3523_v18 = vadd.f32 %v2426_v45, %v798_v41  ;;  %v2428_v13 = vpop.f32.mrb[11].mxu1  ;;  %v2433_v47 = vmax.f32 %v3521_v11, 0.0 }
 0x314   :  { %v3524_v46 = vadd.f32 %v2428_v13, %v802_v42  ;;  %v2434_v49 = vmax.f32 %v3522_v16, 0.0 }
 0x315   :  { %v2437_v48 = vmax.f32 %v3523_v18, 0.0 }
 0x316   :  { %v2438_v50 = vmax.f32 %v3524_v46, 0.0 }
 0x317   :  { %v2441_v51 = vpack.c.bf16 %v2437_v48, %v2433_v47 }
 0x318   :  { %v2442_v10 = vpack.c.bf16 %v2438_v50, %v2434_v49 }
 0x31a   :  { %2914 = vmatprep.mubr.bf16.mxu0 %v2442_v10 }
 0x31b   :  { %2915 = vmatmul.mubr.bf16.vlgmr.msra.gmra.mrb[16].mxu0 %v2441_v51 }
 0x3ee   :  { %v2916_v57 = vpop.f32.mrb[16].mxu0 }
 0x3ef   :  { %v3525_v58 = vadd.f32 %v2916_v57, %v2512_v55  ;;  %v2918_v52 = vpop.f32.mrb[17].mxu0 }
 0x3f0   :  { %v3526_v59 = vadd.f32 %v2918_v52, %v2516_v56  ;;  %v2920_v24 = vpop.f32.mrb[18].mxu0 }
 0x3f1   :  { %v3527_v60 = vadd.f32 %v2920_v24, %v2512_v55  ;;  %v2922_v61 = vpop.f32.mrb[19].mxu0  ;;  %v2925_v63 = vmax.f32 %v3525_v58, 0.0 }
 0x3f2   :  { %v3528_v62 = vadd.f32 %v2922_v61, %v2516_v56  ;;  %v2926_v2 = vmax.f32 %v3526_v59, 0.0 }
 0x3f3   :  { %v2927_v1 = vmax.f32 %v3527_v60, 0.0 }
 0x3f4   :  { %v2928_v3 = vmax.f32 %v3528_v62, 0.0 }
 0x3f5   :  { %v2929_v4 = vpack.c.bf16 %v2927_v1, %v2925_v63 }
 0x3f6   :  { %v2930_v5 = vpack.c.bf16 %v2928_v3, %v2926_v2 }
 0x3f8   :  { %3098 = vmatprep.mubr.bf16.mxu1 %v2930_v5 }
 0x3f9   :  { %3099 = vmatmul.mubr.bf16.vlgmr.msra.gmra.mrb[12].mxu1 %v2929_v4 }
 0x4cc   :  { %v3507_v6 = vpop.f32.mrb[12].mxu1 }
 0x4cd   :  { %v3508_v19 = vpop.f32.mrb[13].mxu1 }
 0x4ce   :  { %v3509_v7 = vadd.f32 %v3508_v19, %v3507_v6  ;;  %v3510_v8 = vpop.f32.mrb[14].mxu1 }
 0x4cf   :  { %v3511_v9 = vpop.f32.mrb[15].mxu1 }
 0x4d0   :  { %v3101_v12 = vadd.f32 %v3509_v7, %v3474_v17  ;;  %v3512_v14 = vadd.f32 %v3511_v9, %v3510_v8 }
 0x4d2   :  { %v3107_v20 = vmax.f32 %v3101_v12, 0.0  ;;  %v3104_v21 = vadd.f32 %v3512_v14, %v3474_v17 }
 0x4d4   :  { %3109 = vst [vmem:[%s4418_s9] sm:$0xff] %v3107_v20  ;;  %v3108_v22 = vmax.f32 %v3104_v21, 0.0 }
 0x4d6   :  { %3110 = vst [vmem:[%s4418_s9 + $0x8] sm:$0xff] %v3108_v22 }
 0x4d7   :  { %3115 = vsyncpa [#allocation3], 1 }
 0x4d8   :  { %3116 = vsyncpa [#allocation5], 1 }
 0x4d9   :  { %3117 = vsyncpa [#allocation8], 1 }

</bundles_post_ra>
